<compile_context>
chip_gen: v6e
topology: v6e:2x2x1
jax: 0.10.0
libtpu: 0.0.40
codegen_flags: <defaults>
</compile_context>

<pallas_src>
import functools
import math

import jax
import jax.numpy as jnp
from jax.experimental import pallas as pl
from jax.experimental.pallas import tpu as pltpu


# ----------------------------------------------------------------------------
# In-kernel helpers (only primitives with guaranteed Mosaic lowerings)
# ----------------------------------------------------------------------------

def _rmsnorm(x, w, eps=1e-5):
    ms = jnp.mean(x * x, axis=-1, keepdims=True)
    return x * jax.lax.rsqrt(ms + eps) * w


def _erf_poly(x):
    # Abramowitz & Stegun 7.1.26 rational approximation, |err| <= 1.5e-7.
    # Used instead of lax.erf to avoid relying on an erf lowering in Mosaic.
    p = 0.3275911
    a1, a2, a3, a4, a5 = (0.254829592, -0.284496736, 1.421413741,
                          -1.453152027, 1.061405429)
    ax = jnp.abs(x)
    t = 1.0 / (1.0 + p * ax)
    poly = ((((a5 * t + a4) * t + a3) * t + a2) * t + a1) * t
    y = 1.0 - poly * jnp.exp(-ax * ax)
    return jnp.where(x >= 0, y, -y)


def _gelu_exact(x):
    # PyTorch nn.GELU() default (erf-based), to float precision.
    return 0.5 * x * (1.0 + _erf_poly(x * 0.7071067811865476))


# ----------------------------------------------------------------------------
# Fused Block kernel (one batch element per grid step)
# ----------------------------------------------------------------------------

def block_kernel(x_ref, ln1_ref, wqkv_ref, wproj_ref, bproj_ref,
                 ln2_ref, w1_ref, b1_ref, w2_ref, b2_ref,
                 cos_ref, sin_ref, o_ref, *, n_head):
    x = x_ref[0]                                   # (T, C) f32
    T, C = x.shape
    hs = C // n_head                               # head_size
    hh = hs // 2

    # ---- RMSNorm 1 ----
    xn = _rmsnorm(x, ln1_ref[...])

    # ---- fused QKV projection: one lane-dense (T,C)x(C,3C) MXU matmul ----
    qkv = jnp.dot(xn, wqkv_ref[...], preferred_element_type=jnp.float32)
    q = qkv[:, :C]                                 # C**-0.5 folded into Wq
    k = qkv[:, C:2 * C]
    v = qkv[:, 2 * C:]

    # ---- RoPE: Wq/Wk columns were permuted to [all even | all odd] order,
    #      so the interleaved rotation is a single half-roll (XLU) ----
    cos = cos_ref[...]                             # (T, C)
    sin = sin_ref[...]                             # (T, C), sign-folded
    q = q * cos + pltpu.roll(q, shift=C // 2, axis=1) * sin
    k = k * cos + pltpu.roll(k, shift=C // 2, axis=1) * sin

    # ---- causal mask, built once and reused for every head ----
    row = jax.lax.broadcasted_iota(jnp.int32, (T, T), 0)
    col = jax.lax.broadcasted_iota(jnp.int32, (T, T), 1)
    causal = col <= row

    # ---- per-head attention, accumulated straight through the out-proj ----
    dn = (((1,), (1,)), ((), ()))                  # contract last dims
    acc = None
    for h in range(n_head):
        ev = slice(h * hh, (h + 1) * hh)           # even-dim columns of head h
        od = slice(C // 2 + h * hh, C // 2 + (h + 1) * hh)  # odd-dim columns
        s = (jax.lax.dot_general(q[:, ev], k[:, ev], dn,
                                 preferred_element_type=jnp.float32)
             + jax.lax.dot_general(q[:, od], k[:, od], dn,
                                   preferred_element_type=jnp.float32))
        s = jnp.where(causal, s, -jnp.inf)
        m = jnp.max(s, axis=-1, keepdims=True)
        e = jnp.exp(s - m)
        denom = jnp.sum(e, axis=-1, keepdims=True)
        p = e * pl.reciprocal(denom, approx=True)
        # TODO(synk): attention-weight dropout (training mode) omitted; eval
        # mode dropout is identity.
        o_h = jnp.dot(p, v[:, h * hs:(h + 1) * hs],
                      preferred_element_type=jnp.float32)           # (T, hs)
        contrib = jnp.dot(o_h, wproj_ref[h * hs:(h + 1) * hs, :],
                          preferred_element_type=jnp.float32)       # (T, C)
        acc = contrib if acc is None else acc + contrib

    x1 = x + acc + bproj_ref[...]                  # attention residual

    # ---- RMSNorm 2 + FeedForward (Linear -> exact GELU -> Linear) ----
    x1n = _rmsnorm(x1, ln2_ref[...])
    h1 = jnp.dot(x1n, w1_ref[...], preferred_element_type=jnp.float32) + b1_ref[...]
    g = _gelu_exact(h1)
    y2 = jnp.dot(g, w2_ref[...], preferred_element_type=jnp.float32) + b2_ref[...]

    o_ref[0] = (x1 + y2).astype(o_ref.dtype)


# ----------------------------------------------------------------------------
# Wrapper: weight fusion / de-interleave / RoPE tables + pallas_call
# ----------------------------------------------------------------------------

def block_forward(x, params, n_head):
    B, T, C = x.shape
    hs = C // n_head
    hh = hs // 2
    f32 = jnp.float32

    # Column permutation taking each head's interleaved dims to
    # [all heads' even dims | all heads' odd dims]; applied identically to
    # Wq, Wk and the cos/sin tables so per-head scores are unchanged.
    head_idx = jnp.arange(n_head)
    pair_idx = jnp.arange(hh)
    ev_cols = (head_idx[:, None] * hs + 2 * pair_idx[None, :]).reshape(-1)
    perm = jnp.concatenate([ev_cols, ev_cols + 1])                  # (C,)

    scale = C ** (-0.5)     # module scales by n_embd**-0.5 (not head_size**-0.5)
    wq_p = params["wq"][:, perm] * scale        # fold attention scale into Wq
    wk_p = params["wk"][:, perm]
    wqkv = jnp.concatenate([wq_p, wk_p, params["wv"]], axis=1)      # (C, 3C)

    # RoPE tables in the permuted layout.
    pos = jnp.arange(T, dtype=f32)[:, None]
    div = jnp.exp(jnp.arange(0, hs, 2, dtype=f32) * -(math.log(10000.0) / hs))
    cos_h = jnp.cos(pos * div)                                      # (T, hs//2)
    sin_h = jnp.sin(pos * div)
    cos_full = jnp.tile(cos_h, (1, 2 * n_head))                     # (T, C)
    sin_signed = jnp.concatenate([-jnp.tile(sin_h, (1, n_head)),
                                  jnp.tile(sin_h, (1, n_head))], axis=-1)

    row2 = lambda a: a.reshape(1, -1).astype(f32)

    def _rep(shape):
        n = len(shape)
        return pl.BlockSpec(shape, lambda b: (0,) * n)

    kernel = functools.partial(block_kernel, n_head=n_head)

    return pl.pallas_call(
        kernel,
        out_shape=jax.ShapeDtypeStruct((B, T, C), x.dtype),
        grid_spec=pltpu.PrefetchScalarGridSpec(
            num_scalar_prefetch=0,
            grid=(B,),
            in_specs=[
                pl.BlockSpec((1, T, C), lambda b: (b, 0, 0)),   # x
                _rep((1, C)),          # ln1 weight
                _rep((C, 3 * C)),      # fused Wqkv (scale + de-interleave)
                _rep((C, C)),          # Wproj
                _rep((1, C)),          # bproj
                _rep((1, C)),          # ln2 weight
                _rep((C, 4 * C)),      # FFN W1
                _rep((1, 4 * C)),      # FFN b1
                _rep((4 * C, C)),      # FFN W2
                _rep((1, C)),          # FFN b2
                _rep((T, C)),          # cos table (permuted layout)
                _rep((T, C)),          # sin table (permuted, sign-folded)
            ],
            out_specs=pl.BlockSpec((1, T, C), lambda b: (b, 0, 0)),
        ),
        compiler_params=pltpu.CompilerParams(
            dimension_semantics=("parallel",),
            vmem_limit_bytes=32 * 1024 * 1024,
        ),
    )(x, row2(params["ln1"]), wqkv, params["wproj"], row2(params["bproj"]),
      row2(params["ln2"]), params["w1"], row2(params["b1"]),
      params["w2"], row2(params["b2"]), cos_full, sin_signed)


# ----------------------------------------------------------------------------
# Pure-JAX reference (faithful replica of the PyTorch forward, eval mode)
# ----------------------------------------------------------------------------

def block_reference(x, params, n_head):
    B, T, C = x.shape
    hs = C // n_head

    def rms(v, w, eps=1e-5):
        return v * jax.lax.rsqrt(jnp.mean(v * v, axis=-1, keepdims=True) + eps) * w

    xn = rms(x, params["ln1"])

    pos = jnp.arange(T, dtype=jnp.float32)[:, None]
    div = jnp.exp(jnp.arange(0, hs, 2, dtype=jnp.float32) * -(math.log(10000.0) / hs))
    sin_e = jnp.sin(pos * div)[None]
    cos_e = jnp.cos(pos * div)[None]

    outs = []
    for h in range(n_head):
        sl = slice(h * hs, (h + 1) * hs)
        q = xn @ params["wq"][:, sl]
        k = xn @ params["wk"][:, sl]
        v = xn @ params["wv"][:, sl]
        q_r = jnp.zeros_like(q)
        k_r = jnp.zeros_like(k)
        q_r = q_r.at[..., ::2].set(q[..., ::2] * cos_e - q[..., 1::2] * sin_e)
        q_r = q_r.at[..., 1::2].set(q[..., ::2] * sin_e + q[..., 1::2] * cos_e)
        k_r = k_r.at[..., ::2].set(k[..., ::2] * cos_e - k[..., 1::2] * sin_e)
        k_r = k_r.at[..., 1::2].set(k[..., ::2] * sin_e + k[..., 1::2] * cos_e)
        wei = q_r @ jnp.swapaxes(k_r, -2, -1) * C ** (-0.5)
        mask = jnp.tril(jnp.ones((T, T), jnp.float32))
        wei = jnp.where(mask == 0, -jnp.inf, wei)
        wei = jax.nn.softmax(wei, axis=-1)
        outs.append(wei @ v)

    att = jnp.concatenate(outs, axis=-1)
    x1 = x + att @ params["wproj"] + params["bproj"]

    x1n = rms(x1, params["ln2"])
    h1 = x1n @ params["w1"] + params["b1"]
    g = jax.nn.gelu(h1, approximate=False)       # exact erf GELU (PyTorch default)
    y2 = g @ params["w2"] + params["b2"]
    return x1 + y2


if __name__ == "__main__":
    # Small shapes consistent with Block(n_embd, n_head):
    # batch=2, seq=16, n_embd=128, n_head=4 (head_size=32).
    B, T, C, NH = 2, 16, 128, 4

    key = jax.random.PRNGKey(0)
    ks = jax.random.split(key, 12)
    f32 = jnp.float32
    x = jax.random.normal(ks[0], (B, T, C), dtype=f32)
    params = dict(
        ln1=1.0 + 0.1 * jax.random.normal(ks[1], (C,), dtype=f32),
        ln2=1.0 + 0.1 * jax.random.normal(ks[2], (C,), dtype=f32),
        wq=0.02 * jax.random.normal(ks[3], (C, C), dtype=f32),
        wk=0.02 * jax.random.normal(ks[4], (C, C), dtype=f32),
        wv=0.02 * jax.random.normal(ks[5], (C, C), dtype=f32),
        wproj=0.02 * jax.random.normal(ks[6], (C, C), dtype=f32),
        bproj=0.02 * jax.random.normal(ks[7], (C,), dtype=f32),
        w1=0.02 * jax.random.normal(ks[8], (C, 4 * C), dtype=f32),
        b1=0.02 * jax.random.normal(ks[9], (4 * C,), dtype=f32),
        w2=0.02 * jax.random.normal(ks[10], (4 * C, C), dtype=f32),
        b2=0.02 * jax.random.normal(ks[11], (C,), dtype=f32),
    )

    out = jax.block_until_ready(block_forward(x, params, NH))

    ref = block_reference(x, params, NH)
    max_err = float(jnp.max(jnp.abs(out - ref)))
    assert max_err < 1e-2, f"mismatch vs reference: max abs err {max_err}"

    print("KERNEL_OK")
</pallas_src>

<mosaic_0001>
module attributes {stable_mosaic.version = 11 : i64} {
  func.func @block_kernel(%arg0: i32, %arg1: memref<1x16x128xf32, #tpu.memory_space<vmem>>, %arg2: memref<1x128xf32, #tpu.memory_space<vmem>>, %arg3: memref<128x384xf32, #tpu.memory_space<vmem>>, %arg4: memref<128x128xf32, #tpu.memory_space<vmem>>, %arg5: memref<1x128xf32, #tpu.memory_space<vmem>>, %arg6: memref<1x128xf32, #tpu.memory_space<vmem>>, %arg7: memref<128x512xf32, #tpu.memory_space<vmem>>, %arg8: memref<1x512xf32, #tpu.memory_space<vmem>>, %arg9: memref<512x128xf32, #tpu.memory_space<vmem>>, %arg10: memref<1x128xf32, #tpu.memory_space<vmem>>, %arg11: memref<16x128xf32, #tpu.memory_space<vmem>>, %arg12: memref<16x128xf32, #tpu.memory_space<vmem>>, %arg13: memref<1x16x128xf32, #tpu.memory_space<vmem>>) attributes {dimension_semantics = [#tpu.dimension_semantics<parallel>], iteration_bounds = array<i64: 2>, scalar_prefetch = 0 : i64, scratch_operands = 0 : i64, tpu.core_type = #tpu.core_type<tc>, window_params = [{transform_indices = @transform_0, window_bounds = array<i64: 1, 16, 128>}, {pipeline_mode = #tpu.pipeline_mode<synchronous>, transform_indices = @transform_1, window_bounds = array<i64: 1, 128>}, {pipeline_mode = #tpu.pipeline_mode<synchronous>, transform_indices = @transform_2, window_bounds = array<i64: 128, 384>}, {pipeline_mode = #tpu.pipeline_mode<synchronous>, transform_indices = @transform_3, window_bounds = array<i64: 128, 128>}, {pipeline_mode = #tpu.pipeline_mode<synchronous>, transform_indices = @transform_4, window_bounds = array<i64: 1, 128>}, {pipeline_mode = #tpu.pipeline_mode<synchronous>, transform_indices = @transform_5, window_bounds = array<i64: 1, 128>}, {pipeline_mode = #tpu.pipeline_mode<synchronous>, transform_indices = @transform_6, window_bounds = array<i64: 128, 512>}, {pipeline_mode = #tpu.pipeline_mode<synchronous>, transform_indices = @transform_7, window_bounds = array<i64: 1, 512>}, {pipeline_mode = #tpu.pipeline_mode<synchronous>, transform_indices = @transform_8, window_bounds = array<i64: 512, 128>}, {pipeline_mode = #tpu.pipeline_mode<synchronous>, transform_indices = @transform_9, window_bounds = array<i64: 1, 128>}, {pipeline_mode = #tpu.pipeline_mode<synchronous>, transform_indices = @transform_10, window_bounds = array<i64: 16, 128>}, {pipeline_mode = #tpu.pipeline_mode<synchronous>, transform_indices = @transform_11, window_bounds = array<i64: 16, 128>}, {transform_indices = @transform_12, window_bounds = array<i64: 1, 16, 128>}]} {
    %c0 = arith.constant 0 : index
    %c0_0 = arith.constant 0 : index
    %c0_1 = arith.constant 0 : index
    %0 = vector.load %arg1[%c0, %c0_0, %c0_1] : memref<1x16x128xf32, #tpu.memory_space<vmem>>, vector<1x16x128xf32>
    %1 = vector.shape_cast %0 : vector<1x16x128xf32> to vector<16x128xf32>
    %c0_2 = arith.constant 0 : index
    %c0_3 = arith.constant 0 : index
    %2 = vector.load %arg2[%c0_2, %c0_3] : memref<1x128xf32, #tpu.memory_space<vmem>>, vector<1x128xf32>
    %3 = arith.mulf %1, %1 : vector<16x128xf32>
    %cst = arith.constant dense<0.000000e+00> : vector<16xf32>
    %4 = vector.multi_reduction <add>, %3, %cst [1] : vector<16x128xf32> to vector<16xf32>
    %5 = vector.shape_cast %4 : vector<16xf32> to vector<16x1xf32>
    %cst_4 = arith.constant 1.280000e+02 : f32
    %6 = vector.broadcast %cst_4 : f32 to vector<16x1xf32>
    %7 = arith.divf %5, %6 : vector<16x1xf32>
    %cst_5 = arith.constant 9.99999974E-6 : f32
    %8 = vector.broadcast %cst_5 : f32 to vector<16x1xf32>
    %9 = arith.addf %7, %8 : vector<16x1xf32>
    %10 = math.rsqrt %9 : vector<16x1xf32>
    %11 = vector.broadcast %10 : vector<16x1xf32> to vector<16x128xf32>
    %12 = arith.mulf %1, %11 : vector<16x128xf32>
    %13 = vector.broadcast %2 : vector<1x128xf32> to vector<16x128xf32>
    %14 = arith.mulf %12, %13 : vector<16x128xf32>
    %c0_6 = arith.constant 0 : index
    %c0_7 = arith.constant 0 : index
    %15 = vector.load %arg3[%c0_6, %c0_7] : memref<128x384xf32, #tpu.memory_space<vmem>>, vector<128x384xf32>
    %cst_8 = arith.constant dense<0.000000e+00> : vector<16x384xf32>
    %16 = tpu.matmul %14, %15, %cst_8 {dimension_numbers = #tpu.dot_dimension_numbers<[1], [0], [0], [1], [0, 0, 1, 1], [], []>} : vector<16x128xf32>, vector<128x384xf32>, vector<16x384xf32> -> vector<16x384xf32>
    %17 = vector.extract_strided_slice %16 {offsets = [0, 0], sizes = [16, 128], strides = [1, 1]} : vector<16x384xf32> to vector<16x128xf32>
    %18 = vector.extract_strided_slice %16 {offsets = [0, 128], sizes = [16, 128], strides = [1, 1]} : vector<16x384xf32> to vector<16x128xf32>
    %19 = vector.extract_strided_slice %16 {offsets = [0, 256], sizes = [16, 128], strides = [1, 1]} : vector<16x384xf32> to vector<16x128xf32>
    %c0_9 = arith.constant 0 : index
    %c0_10 = arith.constant 0 : index
    %20 = vector.load %arg11[%c0_9, %c0_10] : memref<16x128xf32, #tpu.memory_space<vmem>>, vector<16x128xf32>
    %c0_11 = arith.constant 0 : index
    %c0_12 = arith.constant 0 : index
    %21 = vector.load %arg12[%c0_11, %c0_12] : memref<16x128xf32, #tpu.memory_space<vmem>>, vector<16x128xf32>
    %22 = arith.mulf %17, %20 : vector<16x128xf32>
    %c64_i32 = arith.constant 64 : i32
    %23 = tpu.dynamic_rotate %17 by %c64_i32 dim 1 : vector<16x128xf32>, i32 -> vector<16x128xf32>
    %24 = arith.mulf %23, %21 : vector<16x128xf32>
    %25 = arith.addf %22, %24 : vector<16x128xf32>
    %26 = arith.mulf %18, %20 : vector<16x128xf32>
    %c64_i32_13 = arith.constant 64 : i32
    %27 = tpu.dynamic_rotate %18 by %c64_i32_13 dim 1 : vector<16x128xf32>, i32 -> vector<16x128xf32>
    %28 = arith.mulf %27, %21 : vector<16x128xf32>
    %29 = arith.addf %26, %28 : vector<16x128xf32>
    %30 = tpu.iota {dimensions = array<i32: 0>} : vector<16x16xi32>
    %31 = tpu.iota {dimensions = array<i32: 1>} : vector<16x16xi32>
    %32 = arith.cmpi sle, %31, %30 : vector<16x16xi32>
    %33 = vector.extract_strided_slice %25 {offsets = [0, 0], sizes = [16, 16], strides = [1, 1]} : vector<16x128xf32> to vector<16x16xf32>
    %34 = vector.extract_strided_slice %29 {offsets = [0, 0], sizes = [16, 16], strides = [1, 1]} : vector<16x128xf32> to vector<16x16xf32>
    %cst_14 = arith.constant dense<0.000000e+00> : vector<16x16xf32>
    %35 = tpu.matmul %33, %34, %cst_14 {dimension_numbers = #tpu.dot_dimension_numbers<[1], [1], [0], [0], [0, 0, 1, 0], [], []>} : vector<16x16xf32>, vector<16x16xf32>, vector<16x16xf32> -> vector<16x16xf32>
    %36 = vector.extract_strided_slice %25 {offsets = [0, 64], sizes = [16, 16], strides = [1, 1]} : vector<16x128xf32> to vector<16x16xf32>
    %37 = vector.extract_strided_slice %29 {offsets = [0, 64], sizes = [16, 16], strides = [1, 1]} : vector<16x128xf32> to vector<16x16xf32>
    %cst_15 = arith.constant dense<0.000000e+00> : vector<16x16xf32>
    %38 = tpu.matmul %36, %37, %cst_15 {dimension_numbers = #tpu.dot_dimension_numbers<[1], [1], [0], [0], [0, 0, 1, 0], [], []>} : vector<16x16xf32>, vector<16x16xf32>, vector<16x16xf32> -> vector<16x16xf32>
    %39 = arith.addf %35, %38 : vector<16x16xf32>
    %cst_16 = arith.constant 0xFF800000 : f32
    %40 = vector.broadcast %cst_16 : f32 to vector<16x16xf32>
    %41 = arith.select %32, %39, %40 : vector<16x16xi1>, vector<16x16xf32>
    %cst_17 = arith.constant dense<0xFF800000> : vector<16xf32>
    %42 = vector.multi_reduction <maximumf>, %41, %cst_17 [1] : vector<16x16xf32> to vector<16xf32>
    %43 = vector.shape_cast %42 : vector<16xf32> to vector<16x1xf32>
    %44 = vector.broadcast %43 : vector<16x1xf32> to vector<16x16xf32>
    %45 = arith.subf %41, %44 : vector<16x16xf32>
    %46 = math.exp %45 : vector<16x16xf32>
    %cst_18 = arith.constant dense<0.000000e+00> : vector<16xf32>
    %47 = vector.multi_reduction <add>, %46, %cst_18 [1] : vector<16x16xf32> to vector<16xf32>
    %48 = vector.shape_cast %47 : vector<16xf32> to vector<16x1xf32>
    %49 = tpu.reciprocal %48 {approx = true} : vector<16x1xf32> -> vector<16x1xf32>
    %50 = vector.broadcast %49 : vector<16x1xf32> to vector<16x16xf32>
    %51 = arith.mulf %46, %50 : vector<16x16xf32>
    %52 = vector.extract_strided_slice %19 {offsets = [0, 0], sizes = [16, 32], strides = [1, 1]} : vector<16x128xf32> to vector<16x32xf32>
    %cst_19 = arith.constant dense<0.000000e+00> : vector<16x32xf32>
    %53 = tpu.matmul %51, %52, %cst_19 {dimension_numbers = #tpu.dot_dimension_numbers<[1], [0], [0], [1], [0, 0, 1, 1], [], []>} : vector<16x16xf32>, vector<16x32xf32>, vector<16x32xf32> -> vector<16x32xf32>
    %c0_20 = arith.constant 0 : index
    %c0_21 = arith.constant 0 : index
    %54 = vector.load %arg4[%c0_20, %c0_21] : memref<128x128xf32, #tpu.memory_space<vmem>>, vector<32x128xf32>
    %cst_22 = arith.constant dense<0.000000e+00> : vector<16x128xf32>
    %55 = tpu.matmul %53, %54, %cst_22 {dimension_numbers = #tpu.dot_dimension_numbers<[1], [0], [0], [1], [0, 0, 1, 1], [], []>} : vector<16x32xf32>, vector<32x128xf32>, vector<16x128xf32> -> vector<16x128xf32>
    %56 = vector.extract_strided_slice %25 {offsets = [0, 16], sizes = [16, 16], strides = [1, 1]} : vector<16x128xf32> to vector<16x16xf32>
    %57 = vector.extract_strided_slice %29 {offsets = [0, 16], sizes = [16, 16], strides = [1, 1]} : vector<16x128xf32> to vector<16x16xf32>
    %cst_23 = arith.constant dense<0.000000e+00> : vector<16x16xf32>
    %58 = tpu.matmul %56, %57, %cst_23 {dimension_numbers = #tpu.dot_dimension_numbers<[1], [1], [0], [0], [0, 0, 1, 0], [], []>} : vector<16x16xf32>, vector<16x16xf32>, vector<16x16xf32> -> vector<16x16xf32>
    %59 = vector.extract_strided_slice %25 {offsets = [0, 80], sizes = [16, 16], strides = [1, 1]} : vector<16x128xf32> to vector<16x16xf32>
    %60 = vector.extract_strided_slice %29 {offsets = [0, 80], sizes = [16, 16], strides = [1, 1]} : vector<16x128xf32> to vector<16x16xf32>
    %cst_24 = arith.constant dense<0.000000e+00> : vector<16x16xf32>
    %61 = tpu.matmul %59, %60, %cst_24 {dimension_numbers = #tpu.dot_dimension_numbers<[1], [1], [0], [0], [0, 0, 1, 0], [], []>} : vector<16x16xf32>, vector<16x16xf32>, vector<16x16xf32> -> vector<16x16xf32>
    %62 = arith.addf %58, %61 : vector<16x16xf32>
    %cst_25 = arith.constant 0xFF800000 : f32
    %63 = vector.broadcast %cst_25 : f32 to vector<16x16xf32>
    %64 = arith.select %32, %62, %63 : vector<16x16xi1>, vector<16x16xf32>
    %cst_26 = arith.constant dense<0xFF800000> : vector<16xf32>
    %65 = vector.multi_reduction <maximumf>, %64, %cst_26 [1] : vector<16x16xf32> to vector<16xf32>
    %66 = vector.shape_cast %65 : vector<16xf32> to vector<16x1xf32>
    %67 = vector.broadcast %66 : vector<16x1xf32> to vector<16x16xf32>
    %68 = arith.subf %64, %67 : vector<16x16xf32>
    %69 = math.exp %68 : vector<16x16xf32>
    %cst_27 = arith.constant dense<0.000000e+00> : vector<16xf32>
    %70 = vector.multi_reduction <add>, %69, %cst_27 [1] : vector<16x16xf32> to vector<16xf32>
    %71 = vector.shape_cast %70 : vector<16xf32> to vector<16x1xf32>
    %72 = tpu.reciprocal %71 {approx = true} : vector<16x1xf32> -> vector<16x1xf32>
    %73 = vector.broadcast %72 : vector<16x1xf32> to vector<16x16xf32>
    %74 = arith.mulf %69, %73 : vector<16x16xf32>
    %75 = vector.extract_strided_slice %19 {offsets = [0, 32], sizes = [16, 32], strides = [1, 1]} : vector<16x128xf32> to vector<16x32xf32>
    %cst_28 = arith.constant dense<0.000000e+00> : vector<16x32xf32>
    %76 = tpu.matmul %74, %75, %cst_28 {dimension_numbers = #tpu.dot_dimension_numbers<[1], [0], [0], [1], [0, 0, 1, 1], [], []>} : vector<16x16xf32>, vector<16x32xf32>, vector<16x32xf32> -> vector<16x32xf32>
    %c32 = arith.constant 32 : index
    %c0_29 = arith.constant 0 : index
    %77 = vector.load %arg4[%c32, %c0_29] : memref<128x128xf32, #tpu.memory_space<vmem>>, vector<32x128xf32>
    %cst_30 = arith.constant dense<0.000000e+00> : vector<16x128xf32>
    %78 = tpu.matmul %76, %77, %cst_30 {dimension_numbers = #tpu.dot_dimension_numbers<[1], [0], [0], [1], [0, 0, 1, 1], [], []>} : vector<16x32xf32>, vector<32x128xf32>, vector<16x128xf32> -> vector<16x128xf32>
    %79 = arith.addf %55, %78 : vector<16x128xf32>
    %80 = vector.extract_strided_slice %25 {offsets = [0, 32], sizes = [16, 16], strides = [1, 1]} : vector<16x128xf32> to vector<16x16xf32>
    %81 = vector.extract_strided_slice %29 {offsets = [0, 32], sizes = [16, 16], strides = [1, 1]} : vector<16x128xf32> to vector<16x16xf32>
    %cst_31 = arith.constant dense<0.000000e+00> : vector<16x16xf32>
    %82 = tpu.matmul %80, %81, %cst_31 {dimension_numbers = #tpu.dot_dimension_numbers<[1], [1], [0], [0], [0, 0, 1, 0], [], []>} : vector<16x16xf32>, vector<16x16xf32>, vector<16x16xf32> -> vector<16x16xf32>
    %83 = vector.extract_strided_slice %25 {offsets = [0, 96], sizes = [16, 16], strides = [1, 1]} : vector<16x128xf32> to vector<16x16xf32>
    %84 = vector.extract_strided_slice %29 {offsets = [0, 96], sizes = [16, 16], strides = [1, 1]} : vector<16x128xf32> to vector<16x16xf32>
    %cst_32 = arith.constant dense<0.000000e+00> : vector<16x16xf32>
    %85 = tpu.matmul %83, %84, %cst_32 {dimension_numbers = #tpu.dot_dimension_numbers<[1], [1], [0], [0], [0, 0, 1, 0], [], []>} : vector<16x16xf32>, vector<16x16xf32>, vector<16x16xf32> -> vector<16x16xf32>
    %86 = arith.addf %82, %85 : vector<16x16xf32>
    %cst_33 = arith.constant 0xFF800000 : f32
    %87 = vector.broadcast %cst_33 : f32 to vector<16x16xf32>
    %88 = arith.select %32, %86, %87 : vector<16x16xi1>, vector<16x16xf32>
    %cst_34 = arith.constant dense<0xFF800000> : vector<16xf32>
    %89 = vector.multi_reduction <maximumf>, %88, %cst_34 [1] : vector<16x16xf32> to vector<16xf32>
    %90 = vector.shape_cast %89 : vector<16xf32> to vector<16x1xf32>
    %91 = vector.broadcast %90 : vector<16x1xf32> to vector<16x16xf32>
    %92 = arith.subf %88, %91 : vector<16x16xf32>
    %93 = math.exp %92 : vector<16x16xf32>
    %cst_35 = arith.constant dense<0.000000e+00> : vector<16xf32>
    %94 = vector.multi_reduction <add>, %93, %cst_35 [1] : vector<16x16xf32> to vector<16xf32>
    %95 = vector.shape_cast %94 : vector<16xf32> to vector<16x1xf32>
    %96 = tpu.reciprocal %95 {approx = true} : vector<16x1xf32> -> vector<16x1xf32>
    %97 = vector.broadcast %96 : vector<16x1xf32> to vector<16x16xf32>
    %98 = arith.mulf %93, %97 : vector<16x16xf32>
    %99 = vector.extract_strided_slice %19 {offsets = [0, 64], sizes = [16, 32], strides = [1, 1]} : vector<16x128xf32> to vector<16x32xf32>
    %cst_36 = arith.constant dense<0.000000e+00> : vector<16x32xf32>
    %100 = tpu.matmul %98, %99, %cst_36 {dimension_numbers = #tpu.dot_dimension_numbers<[1], [0], [0], [1], [0, 0, 1, 1], [], []>} : vector<16x16xf32>, vector<16x32xf32>, vector<16x32xf32> -> vector<16x32xf32>
    %c64 = arith.constant 64 : index
    %c0_37 = arith.constant 0 : index
    %101 = vector.load %arg4[%c64, %c0_37] : memref<128x128xf32, #tpu.memory_space<vmem>>, vector<32x128xf32>
    %cst_38 = arith.constant dense<0.000000e+00> : vector<16x128xf32>
    %102 = tpu.matmul %100, %101, %cst_38 {dimension_numbers = #tpu.dot_dimension_numbers<[1], [0], [0], [1], [0, 0, 1, 1], [], []>} : vector<16x32xf32>, vector<32x128xf32>, vector<16x128xf32> -> vector<16x128xf32>
    %103 = arith.addf %79, %102 : vector<16x128xf32>
    %104 = vector.extract_strided_slice %25 {offsets = [0, 48], sizes = [16, 16], strides = [1, 1]} : vector<16x128xf32> to vector<16x16xf32>
    %105 = vector.extract_strided_slice %29 {offsets = [0, 48], sizes = [16, 16], strides = [1, 1]} : vector<16x128xf32> to vector<16x16xf32>
    %cst_39 = arith.constant dense<0.000000e+00> : vector<16x16xf32>
    %106 = tpu.matmul %104, %105, %cst_39 {dimension_numbers = #tpu.dot_dimension_numbers<[1], [1], [0], [0], [0, 0, 1, 0], [], []>} : vector<16x16xf32>, vector<16x16xf32>, vector<16x16xf32> -> vector<16x16xf32>
    %107 = vector.extract_strided_slice %25 {offsets = [0, 112], sizes = [16, 16], strides = [1, 1]} : vector<16x128xf32> to vector<16x16xf32>
    %108 = vector.extract_strided_slice %29 {offsets = [0, 112], sizes = [16, 16], strides = [1, 1]} : vector<16x128xf32> to vector<16x16xf32>
    %cst_40 = arith.constant dense<0.000000e+00> : vector<16x16xf32>
    %109 = tpu.matmul %107, %108, %cst_40 {dimension_numbers = #tpu.dot_dimension_numbers<[1], [1], [0], [0], [0, 0, 1, 0], [], []>} : vector<16x16xf32>, vector<16x16xf32>, vector<16x16xf32> -> vector<16x16xf32>
    %110 = arith.addf %106, %109 : vector<16x16xf32>
    %cst_41 = arith.constant 0xFF800000 : f32
    %111 = vector.broadcast %cst_41 : f32 to vector<16x16xf32>
    %112 = arith.select %32, %110, %111 : vector<16x16xi1>, vector<16x16xf32>
    %cst_42 = arith.constant dense<0xFF800000> : vector<16xf32>
    %113 = vector.multi_reduction <maximumf>, %112, %cst_42 [1] : vector<16x16xf32> to vector<16xf32>
    %114 = vector.shape_cast %113 : vector<16xf32> to vector<16x1xf32>
    %115 = vector.broadcast %114 : vector<16x1xf32> to vector<16x16xf32>
    %116 = arith.subf %112, %115 : vector<16x16xf32>
    %117 = math.exp %116 : vector<16x16xf32>
    %cst_43 = arith.constant dense<0.000000e+00> : vector<16xf32>
    %118 = vector.multi_reduction <add>, %117, %cst_43 [1] : vector<16x16xf32> to vector<16xf32>
    %119 = vector.shape_cast %118 : vector<16xf32> to vector<16x1xf32>
    %120 = tpu.reciprocal %119 {approx = true} : vector<16x1xf32> -> vector<16x1xf32>
    %121 = vector.broadcast %120 : vector<16x1xf32> to vector<16x16xf32>
    %122 = arith.mulf %117, %121 : vector<16x16xf32>
    %123 = vector.extract_strided_slice %19 {offsets = [0, 96], sizes = [16, 32], strides = [1, 1]} : vector<16x128xf32> to vector<16x32xf32>
    %cst_44 = arith.constant dense<0.000000e+00> : vector<16x32xf32>
    %124 = tpu.matmul %122, %123, %cst_44 {dimension_numbers = #tpu.dot_dimension_numbers<[1], [0], [0], [1], [0, 0, 1, 1], [], []>} : vector<16x16xf32>, vector<16x32xf32>, vector<16x32xf32> -> vector<16x32xf32>
    %c96 = arith.constant 96 : index
    %c0_45 = arith.constant 0 : index
    %125 = vector.load %arg4[%c96, %c0_45] : memref<128x128xf32, #tpu.memory_space<vmem>>, vector<32x128xf32>
    %cst_46 = arith.constant dense<0.000000e+00> : vector<16x128xf32>
    %126 = tpu.matmul %124, %125, %cst_46 {dimension_numbers = #tpu.dot_dimension_numbers<[1], [0], [0], [1], [0, 0, 1, 1], [], []>} : vector<16x32xf32>, vector<32x128xf32>, vector<16x128xf32> -> vector<16x128xf32>
    %127 = arith.addf %103, %126 : vector<16x128xf32>
    %128 = arith.addf %1, %127 : vector<16x128xf32>
    %c0_47 = arith.constant 0 : index
    %c0_48 = arith.constant 0 : index
    %129 = vector.load %arg5[%c0_47, %c0_48] : memref<1x128xf32, #tpu.memory_space<vmem>>, vector<1x128xf32>
    %130 = vector.broadcast %129 : vector<1x128xf32> to vector<16x128xf32>
    %131 = arith.addf %128, %130 : vector<16x128xf32>
    %c0_49 = arith.constant 0 : index
    %c0_50 = arith.constant 0 : index
    %132 = vector.load %arg6[%c0_49, %c0_50] : memref<1x128xf32, #tpu.memory_space<vmem>>, vector<1x128xf32>
    %133 = arith.mulf %131, %131 : vector<16x128xf32>
    %cst_51 = arith.constant dense<0.000000e+00> : vector<16xf32>
    %134 = vector.multi_reduction <add>, %133, %cst_51 [1] : vector<16x128xf32> to vector<16xf32>
    %135 = vector.shape_cast %134 : vector<16xf32> to vector<16x1xf32>
    %cst_52 = arith.constant 1.280000e+02 : f32
    %136 = vector.broadcast %cst_52 : f32 to vector<16x1xf32>
    %137 = arith.divf %135, %136 : vector<16x1xf32>
    %cst_53 = arith.constant 9.99999974E-6 : f32
    %138 = vector.broadcast %cst_53 : f32 to vector<16x1xf32>
    %139 = arith.addf %137, %138 : vector<16x1xf32>
    %140 = math.rsqrt %139 : vector<16x1xf32>
    %141 = vector.broadcast %140 : vector<16x1xf32> to vector<16x128xf32>
    %142 = arith.mulf %131, %141 : vector<16x128xf32>
    %143 = vector.broadcast %132 : vector<1x128xf32> to vector<16x128xf32>
    %144 = arith.mulf %142, %143 : vector<16x128xf32>
    %c0_54 = arith.constant 0 : index
    %c0_55 = arith.constant 0 : index
    %145 = vector.load %arg7[%c0_54, %c0_55] : memref<128x512xf32, #tpu.memory_space<vmem>>, vector<128x512xf32>
    %cst_56 = arith.constant dense<0.000000e+00> : vector<16x512xf32>
    %146 = tpu.matmul %144, %145, %cst_56 {dimension_numbers = #tpu.dot_dimension_numbers<[1], [0], [0], [1], [0, 0, 1, 1], [], []>} : vector<16x128xf32>, vector<128x512xf32>, vector<16x512xf32> -> vector<16x512xf32>
    %c0_57 = arith.constant 0 : index
    %c0_58 = arith.constant 0 : index
    %147 = vector.load %arg8[%c0_57, %c0_58] : memref<1x512xf32, #tpu.memory_space<vmem>>, vector<1x512xf32>
    %148 = vector.broadcast %147 : vector<1x512xf32> to vector<16x512xf32>
    %149 = arith.addf %146, %148 : vector<16x512xf32>
    %cst_59 = arith.constant 5.000000e-01 : f32
    %150 = vector.broadcast %cst_59 : f32 to vector<16x512xf32>
    %151 = arith.mulf %150, %149 : vector<16x512xf32>
    %cst_60 = arith.constant 0.707106769 : f32
    %152 = vector.broadcast %cst_60 : f32 to vector<16x512xf32>
    %153 = arith.mulf %149, %152 : vector<16x512xf32>
    %154 = math.absf %153 : vector<16x512xf32>
    %cst_61 = arith.constant 0.327591091 : f32
    %155 = vector.broadcast %cst_61 : f32 to vector<16x512xf32>
    %156 = arith.mulf %155, %154 : vector<16x512xf32>
    %cst_62 = arith.constant 1.000000e+00 : f32
    %157 = vector.broadcast %cst_62 : f32 to vector<16x512xf32>
    %158 = arith.addf %157, %156 : vector<16x512xf32>
    %cst_63 = arith.constant 1.000000e+00 : f32
    %159 = vector.broadcast %cst_63 : f32 to vector<16x512xf32>
    %160 = arith.divf %159, %158 : vector<16x512xf32>
    %cst_64 = arith.constant 1.06140542 : f32
    %161 = vector.broadcast %cst_64 : f32 to vector<16x512xf32>
    %162 = arith.mulf %161, %160 : vector<16x512xf32>
    %cst_65 = arith.constant -1.45315206 : f32
    %163 = vector.broadcast %cst_65 : f32 to vector<16x512xf32>
    %164 = arith.addf %162, %163 : vector<16x512xf32>
    %165 = arith.mulf %164, %160 : vector<16x512xf32>
    %cst_66 = arith.constant 1.42141378 : f32
    %166 = vector.broadcast %cst_66 : f32 to vector<16x512xf32>
    %167 = arith.addf %165, %166 : vector<16x512xf32>
    %168 = arith.mulf %167, %160 : vector<16x512xf32>
    %cst_67 = arith.constant -0.284496725 : f32
    %169 = vector.broadcast %cst_67 : f32 to vector<16x512xf32>
    %170 = arith.addf %168, %169 : vector<16x512xf32>
    %171 = arith.mulf %170, %160 : vector<16x512xf32>
    %cst_68 = arith.constant 0.254829586 : f32
    %172 = vector.broadcast %cst_68 : f32 to vector<16x512xf32>
    %173 = arith.addf %171, %172 : vector<16x512xf32>
    %174 = arith.mulf %173, %160 : vector<16x512xf32>
    %cst_69 = arith.constant 0.000000e+00 : f32
    %175 = vector.broadcast %cst_69 : f32 to vector<16x512xf32>
    %176 = arith.subf %175, %154 : vector<16x512xf32>
    %177 = arith.mulf %176, %154 : vector<16x512xf32>
    %178 = math.exp %177 : vector<16x512xf32>
    %179 = arith.mulf %174, %178 : vector<16x512xf32>
    %cst_70 = arith.constant 1.000000e+00 : f32
    %180 = vector.broadcast %cst_70 : f32 to vector<16x512xf32>
    %181 = arith.subf %180, %179 : vector<16x512xf32>
    %cst_71 = arith.constant 0.000000e+00 : f32
    %182 = vector.broadcast %cst_71 : f32 to vector<16x512xf32>
    %183 = arith.cmpf oge, %153, %182 : vector<16x512xf32>
    %cst_72 = arith.constant 0.000000e+00 : f32
    %184 = vector.broadcast %cst_72 : f32 to vector<16x512xf32>
    %185 = arith.subf %184, %181 : vector<16x512xf32>
    %186 = arith.select %183, %181, %185 : vector<16x512xi1>, vector<16x512xf32>
    %cst_73 = arith.constant 1.000000e+00 : f32
    %187 = vector.broadcast %cst_73 : f32 to vector<16x512xf32>
    %188 = arith.addf %187, %186 : vector<16x512xf32>
    %189 = arith.mulf %151, %188 : vector<16x512xf32>
    %c0_74 = arith.constant 0 : index
    %c0_75 = arith.constant 0 : index
    %190 = vector.load %arg9[%c0_74, %c0_75] : memref<512x128xf32, #tpu.memory_space<vmem>>, vector<512x128xf32>
    %cst_76 = arith.constant dense<0.000000e+00> : vector<16x128xf32>
    %191 = tpu.matmul %189, %190, %cst_76 {dimension_numbers = #tpu.dot_dimension_numbers<[1], [0], [0], [1], [0, 0, 1, 1], [], []>} : vector<16x512xf32>, vector<512x128xf32>, vector<16x128xf32> -> vector<16x128xf32>
    %c0_77 = arith.constant 0 : index
    %c0_78 = arith.constant 0 : index
    %192 = vector.load %arg10[%c0_77, %c0_78] : memref<1x128xf32, #tpu.memory_space<vmem>>, vector<1x128xf32>
    %193 = vector.broadcast %192 : vector<1x128xf32> to vector<16x128xf32>
    %194 = arith.addf %191, %193 : vector<16x128xf32>
    %195 = arith.addf %131, %194 : vector<16x128xf32>
    %c0_79 = arith.constant 0 : index
    %c0_80 = arith.constant 0 : index
    %c0_81 = arith.constant 0 : index
    %196 = vector.load %arg13[%c0_79, %c0_80, %c0_81] : memref<1x16x128xf32, #tpu.memory_space<vmem>>, vector<1x16x128xf32>
    %197 = vector.shape_cast %196 : vector<1x16x128xf32> to vector<16x128xf32>
    %198 = vector.shape_cast %195 : vector<16x128xf32> to vector<1x16x128xf32>
    tpu.vector_store %arg13[%c0_79, %c0_80, %c0_81], %198 {strides = array<i32>} : memref<1x16x128xf32, #tpu.memory_space<vmem>>, vector<1x16x128xf32>,
    return
  }
  func.func @transform_0(%arg0: i32) -> (i32, i32, i32) {
    %c0_i32 = arith.constant 0 : i32
    %c0_i32_0 = arith.constant 0 : i32
    %c0_i32_1 = arith.constant 0 : i32
    return %arg0, %c0_i32, %c0_i32_0 : i32, i32, i32
  }
  func.func @transform_1(%arg0: i32) -> (i32, i32) {
    %c0_i32 = arith.constant 0 : i32
    %c0_i32_0 = arith.constant 0 : i32
    %c0_i32_1 = arith.constant 0 : i32
    return %c0_i32, %c0_i32_0 : i32, i32
  }
  func.func @transform_2(%arg0: i32) -> (i32, i32) {
    %c0_i32 = arith.constant 0 : i32
    %c0_i32_0 = arith.constant 0 : i32
    %c0_i32_1 = arith.constant 0 : i32
    return %c0_i32, %c0_i32_0 : i32, i32
  }
  func.func @transform_3(%arg0: i32) -> (i32, i32) {
    %c0_i32 = arith.constant 0 : i32
    %c0_i32_0 = arith.constant 0 : i32
    %c0_i32_1 = arith.constant 0 : i32
    return %c0_i32, %c0_i32_0 : i32, i32
  }
  func.func @transform_4(%arg0: i32) -> (i32, i32) {
    %c0_i32 = arith.constant 0 : i32
    %c0_i32_0 = arith.constant 0 : i32
    %c0_i32_1 = arith.constant 0 : i32
    return %c0_i32, %c0_i32_0 : i32, i32
  }
  func.func @transform_5(%arg0: i32) -> (i32, i32) {
    %c0_i32 = arith.constant 0 : i32
    %c0_i32_0 = arith.constant 0 : i32
    %c0_i32_1 = arith.constant 0 : i32
    return %c0_i32, %c0_i32_0 : i32, i32
  }
  func.func @transform_6(%arg0: i32) -> (i32, i32) {
    %c0_i32 = arith.constant 0 : i32
    %c0_i32_0 = arith.constant 0 : i32
    %c0_i32_1 = arith.constant 0 : i32
    return %c0_i32, %c0_i32_0 : i32, i32
  }
  func.func @transform_7(%arg0: i32) -> (i32, i32) {
    %c0_i32 = arith.constant 0 : i32
    %c0_i32_0 = arith.constant 0 : i32
    %c0_i32_1 = arith.constant 0 : i32
    return %c0_i32, %c0_i32_0 : i32, i32
  }
  func.func @transform_8(%arg0: i32) -> (i32, i32) {
    %c0_i32 = arith.constant 0 : i32
    %c0_i32_0 = arith.constant 0 : i32
    %c0_i32_1 = arith.constant 0 : i32
    return %c0_i32, %c0_i32_0 : i32, i32
  }
  func.func @transform_9(%arg0: i32) -> (i32, i32) {
    %c0_i32 = arith.constant 0 : i32
    %c0_i32_0 = arith.constant 0 : i32
    %c0_i32_1 = arith.constant 0 : i32
    return %c0_i32, %c0_i32_0 : i32, i32
  }
  func.func @transform_10(%arg0: i32) -> (i32, i32) {
    %c0_i32 = arith.constant 0 : i32
    %c0_i32_0 = arith.constant 0 : i32
    %c0_i32_1 = arith.constant 0 : i32
    return %c0_i32, %c0_i32_0 : i32, i32
  }
  func.func @transform_11(%arg0: i32) -> (i32, i32) {
    %c0_i32 = arith.constant 0 : i32
    %c0_i32_0 = arith.constant 0 : i32
    %c0_i32_1 = arith.constant 0 : i32
    return %c0_i32, %c0_i32_0 : i32, i32
  }
  func.func @transform_12(%arg0: i32) -> (i32, i32, i32) {
    %c0_i32 = arith.constant 0 : i32
    %c0_i32_0 = arith.constant 0 : i32
    %c0_i32_1 = arith.constant 0 : i32
    return %arg0, %c0_i32, %c0_i32_0 : i32, i32, i32
  }
}

</mosaic_0001>

<bundles_post_ra>
// kernel: tpu_custom_call.1
= control target key start
LH: loop header
LB: loop body
LE: loop exit
PB: predicated region body
PF: predicated region fallthrough
CT: control target
= control target key end

     0   :  { %s4887_s0 = inlined_call_operand.hbm [shape: f32[2,16,128], index: 0, kind: input, shape index: {}]   ;;  %s4888_s1 = inlined_call_operand.vmem [shape: f32[1,128], index: 1, kind: input, shape index: {}]   ;;  %s4889_s2 = inlined_call_operand.hbm [shape: f32[128,384], index: 2, kind: input, shape index: {}]   ;;  %s4890_s3 = inlined_call_operand.hbm [shape: f32[128,128], index: 3, kind: input, shape index: {}]   ;;  %s4891_s4 = inlined_call_operand.vmem [shape: f32[1,128], index: 4, kind: input, shape index: {}]   ;;  %s4892_s5 = inlined_call_operand.hbm [shape: f32[1,128], index: 5, kind: input, shape index: {}]   ;;  %s4893_s6 = inlined_call_operand.hbm [shape: f32[128,512], index: 6, kind: input, shape index: {}]   ;;  %s4894_s7 = inlined_call_operand.hbm [shape: f32[1,512], index: 7, kind: input, shape index: {}]   ;;  %s4895_s8 = inlined_call_operand.hbm [shape: f32[512,128], index: 8, kind: input, shape index: {}]   ;;  %s4896_s9 = inlined_call_operand.hbm [shape: f32[1,128], index: 9, kind: input, shape index: {}]   ;;  %s4897_s10 = inlined_call_operand.vmem [shape: f32[16,128], index: 10, kind: input, shape index: {}]   ;;  %s4898_s11 = inlined_call_operand.hbm [shape: f32[16,128], index: 11, kind: input, shape index: {}]   ;;  %s4899_s12 = inlined_call_operand.hbm [shape: f32[2,16,128], index: 12, kind: output, shape index: {}]  }
   0x1   :  { %4909 = sst [smem:[#allocation24_spill]] %s4889_s2 }
   0x2   :  { %4910 = sst [smem:[#allocation25_spill]] %s4890_s3 }
   0x3   :  { %4911 = sst [smem:[#allocation26_spill]] %s4892_s5 }
   0x4   :  { %4912 = sst [smem:[#allocation27_spill]] %s4893_s6 }
   0x5   :  { %4913 = sst [smem:[#allocation28_spill]] %s4894_s7 }
   0x6   :  { %4914 = sst [smem:[#allocation29_spill]] %s4895_s8 }
   0x7   :  { %4915 = sst [smem:[#allocation30_spill]] %s4896_s9 }
   0x8   :  { %4916 = sst [smem:[#allocation31_spill]] %s4899_s12 }
   0x9   :  { %17 = vsyncpa [#allocation3], 0 }
   0xa   :  { %19 = vsyncpa [#allocation3 + $0x1], 0 }
   0xb   :  { %20 = vsyncpa [#allocation6], 0 }
   0xc   :  { %21 = vsyncpa [#allocation9], 0 }
   0xd   :  { %22 = vsyncpa [#allocation12], 0 }
   0xe   :  { %23 = vsyncpa [#allocation15], 0 }
   0xf   :  { %24 = vsyncpa [#allocation4], 0 }
  0x10   :  { %26 = vsyncpa [#allocation4 + $0x1], 0  ;;  %s4226_s21 = smov 0   ;;  %s4228_s22 = smov 0  }
  0x11   :  { %s4230_s23 = smov 0   ;;  %s4232_s24 = smov 0  }
  0x12 LB: > { %s4135_s25 = smov [#allocation5]   ;;  %s4247_s27 = sadd.s32 4294967295, %s4133_s24   ;;  %s4133_s24 = sphi %s4232_s24, %s4952_s24   ;;  %s4129_s23 = sphi %s4230_s23, %s4951_s23   ;;  %s4125_s22 = sphi %s4228_s22, %s4950_s22   ;;  %s4121_s21 = sphi %s4226_s21, %s4949_s21  }
  0x13   : > { %s335_s26 = sshll.u32 %s4135_s25, 4  ;;  %p3188_p0 = scmp.ge.s32.totalorder %s4133_s24, 1  ;;  %s336_s26 = int_to_ptr.vmem [resolvable:$true] %s335_s26 }
  0x14   : > { %p4901_p1 = scmp.eq.s32.totalorder %s4247_s27, 0  ;;  %p320_p2 = scmp.lt.s32.totalorder %s4133_s24, 3 }
  0x15   : > { %s4136_s29 = smov [#allocation8]   ;;  %s4137_s14 = smov [#allocation11]  }
  0x16   : > { %p4252_p3 = pnand %p3188_p0, %p320_p2  ;;  %s365_s30 = sshll.u32 %s4136_s29, 4  ;;  %s366_s30 = int_to_ptr.vmem [resolvable:$true] %s365_s30 }
  0x17   : > { %s389_s15 = sshll.u32 %s4137_s14, 4  ;;  %s3828_s17 = scalar_lea.vmem %s336_s26, 6144  ;;  %s4265_s15 = int_to_ptr.vmem [resolvable:$true] %s389_s15 }
  0x18   : > { %s4917_s28 = scalar_select %p4252_p3, 1, 0 }
  0x19   : > { %p3636_p5 = pneg %p4252_p3  ;;  %p3829_p8 = scmp.ne.s32.totalorder %s336_s26, %s3828_s17 }
  0x1a   : > { %p3836_p11 = scmp.lt.s32.totalorder %s336_s26, %s336_s26  ;;  %p3837_p12 = scmp.lt.s32.totalorder %s3828_s17, %s3828_s17 }
  0x1b   : > { %p4261_p6 = pnand %p3636_p5, %p4901_p1 }
  0x1c   : > { %p3838_p13 = por %p3837_p12, %p3836_p11 }
  0x1d   : > { %p4269_p7 = pneg %p4261_p6 }
  0x1f   : > { %p3831_p9 = pnand %p3829_p8, %p4269_p7 }
  0x21   : > { %p3832_p10 = pneg %p3831_p9 }
  0x23   : > { %p3839_p0 = pnand %p3838_p13, %p3832_p10 }
  0x25   : > { %3842 = shalt.err (!%p3839_p0)
}
  0x26   : > { %s4138_s18 = smov 384   ;;  %s4139_s19 = smov 24  }
  0x27   : > { %s4920_s2 = sld [smem:[#allocation24_spill]]  ;;  %s3854_s29 = scalar_lea.vmem %s366_s30, 16 }
  0x28   : > { %p3855_p2 = scmp.ne.s32.totalorder %s366_s30, %s3854_s29  ;;  %s3861_s14 = scalar_lea.vmem %s366_s30, 32 }
  0x29   : > { %p3862_p9 = scmp.lt.s32.totalorder %s366_s30, %s366_s30  ;;  %p3863_p4 = scmp.lt.s32.totalorder %s3861_s14, %s3854_s29 }
  0x2a   : > { %p3857_p5 = pnand %p3855_p2, %p4269_p7 }
  0x2b   : > { %p3864_p11 = por %p3863_p4, %p3862_p9 }
  0x2c   : > { %p3858_p8 = pneg %p3857_p5 }
  0x2d   : > { %3639 = dma.hbm_to_vmem [thread:$0]  (!%p4261_p6), %s4920_s2, 6144, %s336_s26, [#allocation6], %s4138_s18, %s4138_s18, %s4139_s19  }
  0x2e   : > { %p3865_p10 = pnand %p3864_p11, %p3858_p8 }
  0x30   : > { %3868 = shalt.err (!%p3865_p10)
}
  0x31   : > { %s4921_s5 = sld [smem:[#allocation26_spill]]  ;;  %s3880_s26 = scalar_lea.vmem %s4265_s15, 64 }
  0x32   : > { %p3881_p12 = scmp.ne.s32.totalorder %s4265_s15, %s3880_s26  ;;  %p3888_p2 = scmp.lt.s32.totalorder %s4265_s15, %s4265_s15 }
  0x33   : > { %p3889_p4 = scmp.lt.s32.totalorder %s3880_s26, %s3880_s26 }
  0x34   : > { %p3883_p13 = pnand %p3881_p12, %p4269_p7 }
  0x35   : > { %p3890_p5 = por %p3889_p4, %p3888_p2 }
  0x36   : > { %p3884_p0 = pneg %p3883_p13 }
  0x37   : > { %3645 = dma.hbm_to_vmem [thread:$0]  (!%p4261_p6), %s4921_s5, 16, %s366_s30, [#allocation9]  }
  0x38   : > { %p3891_p8 = pnand %p3890_p5, %p3884_p0 }
  0x3a   : > { %3894 = shalt.err (!%p3891_p8)
}
  0x3b   : > { %s4922_s7 = sld [smem:[#allocation28_spill]]  ;;  %s4140_s30 = smov [#allocation14]  }
  0x3c   : > { %s413_s19 = sshll.u32 %s4140_s30, 4  ;;  %s4141_s20 = smov [#allocation7]   ;;  %s414_s19 = int_to_ptr.vmem [resolvable:$true] %s413_s19 }
  0x3d   : > { %s348_s25 = sshll.u32 %s4141_s20, 4  ;;  %s3906_s29 = scalar_lea.vmem %s414_s19, 16  ;;  %s349_s25 = int_to_ptr.vmem [resolvable:$true] %s348_s25 }
  0x3e   : > { %p3907_p9 = scmp.ne.s32.totalorder %s414_s19, %s3906_s29  ;;  %s3913_s14 = scalar_lea.vmem %s414_s19, 32 }
  0x3f   : > { %p3914_p12 = scmp.lt.s32.totalorder %s414_s19, %s414_s19  ;;  %p3915_p13 = scmp.lt.s32.totalorder %s3913_s14, %s3906_s29 }
  0x40   : > { %p3909_p11 = pnand %p3907_p9, %p4269_p7 }
  0x41   : > { %3651 = dma.hbm_to_vmem [thread:$0]  (!%p4261_p6), %s4922_s7, 64, %s4265_s15, [#allocation12]  }
  0x42   : > { %p3910_p10 = pneg %p3909_p11  ;;  %p3916_p0 = por %p3915_p13, %p3914_p12 }
  0x44   : > { %p3917_p2 = pnand %p3916_p0, %p3910_p10 }
  0x46   : > { %3920 = shalt.err (!%p3917_p2)
}
  0x47   : > { %s4923_s9 = sld [smem:[#allocation30_spill]]  ;;  %s3932_s26 = scalar_lea.vmem %s349_s25, 2048 }
  0x48   : > { %p3933_p4 = scmp.ne.s32.totalorder %s349_s25, %s3932_s26  ;;  %p3940_p9 = scmp.lt.s32.totalorder %s349_s25, %s349_s25 }
  0x49   : > { %p3941_p11 = scmp.lt.s32.totalorder %s3932_s26, %s3932_s26 }
  0x4a   : > { %p3935_p5 = pnand %p3933_p4, %p4269_p7 }
  0x4b   : > { %p3942_p1 = por %p3941_p11, %p3940_p9 }
  0x4c   : > { %p3936_p8 = pneg %p3935_p5 }
  0x4d   : > { %3657 = dma.hbm_to_vmem [thread:$0]  (!%p4261_p6), %s4923_s9, 16, %s414_s19, [#allocation15]  }
  0x4e   : > { %p3943_p3 = pnand %p3942_p1, %p3936_p8 }
  0x50   : > { %3946 = shalt.err (!%p3943_p3)
}
  0x51   : > { %s4903_s12 = smov 128   ;;  %s4905_s18 = smov 8  }
  0x52   : > { %s4924_s3 = sld [smem:[#allocation25_spill]]  ;;  %s4144_s20 = smov [#allocation10]  }
  0x53   : > { %s375_s29 = sshll.u32 %s4144_s20, 4  ;;  %s376_s29 = int_to_ptr.vmem [resolvable:$true] %s375_s29 }
  0x54   : > { %s3958_s14 = scalar_lea.vmem %s376_s29, 8192  ;;  %p3966_p12 = scmp.lt.s32.totalorder %s376_s29, %s376_s29 }
  0x55   : > { %p3959_p10 = scmp.ne.s32.totalorder %s376_s29, %s3958_s14  ;;  %p3967_p13 = scmp.lt.s32.totalorder %s3958_s14, %s3958_s14 }
  0x57   : > { %p3961_p1 = pnand %p3959_p10, %p4269_p7  ;;  %p3968_p0 = por %p3967_p13, %p3966_p12 }
  0x58   : > { %3642 = dma.hbm_to_vmem [thread:$0]  (!%p4261_p6), %s4924_s3, 2048, %s349_s25, [#allocation6], %s4903_s12, %s4903_s12, %s4905_s18  }
  0x59   : > { %p3962_p3 = pneg %p3961_p1 }
  0x5b   : > { %p3969_p2 = pnand %p3968_p0, %p3962_p3 }
  0x5d   : > { %3972 = shalt.err (!%p3969_p2)
}
  0x5e   : > { %s4145_s17 = smov 512   ;;  %s4146_s15 = smov 32  }
  0x5f   : > { %s4925_s6 = sld [smem:[#allocation27_spill]]  ;;  %s4147_s30 = smov [#allocation13]  }
  0x60   : > { %s399_s19 = sshll.u32 %s4147_s30, 4  ;;  %s4148_s20 = smov [#allocation16]   ;;  %s400_s19 = int_to_ptr.vmem [resolvable:$true] %s399_s19 }
  0x61   : > { %s426_s12 = sshll.u32 %s4148_s20, 4  ;;  %s3984_s18 = scalar_lea.vmem %s400_s19, 8192  ;;  %s427_s12 = int_to_ptr.vmem [resolvable:$true] %s426_s12 }
  0x62   : > { %p3985_p4 = scmp.ne.s32.totalorder %s400_s19, %s3984_s18  ;;  %p3992_p9 = scmp.lt.s32.totalorder %s400_s19, %s400_s19 }
  0x63   : > { %p3993_p11 = scmp.lt.s32.totalorder %s3984_s18, %s3984_s18 }
  0x64   : > { %p3987_p5 = pnand %p3985_p4, %p4269_p7 }
  0x65   : > { %3648 = dma.hbm_to_vmem [thread:$0]  (!%p4261_p6), %s4925_s6, 8192, %s376_s29, [#allocation9], %s4145_s17, %s4145_s17, %s4146_s15  }
  0x66   : > { %p3988_p8 = pneg %p3987_p5  ;;  %p3994_p10 = por %p3993_p11, %p3992_p9 }
  0x68   : > { %p3995_p1 = pnand %p3994_p10, %p3988_p8 }
  0x6a   : > { %3998 = shalt.err (!%p3995_p1)
}
  0x6b   : > { %s4926_s14 = smov 8   ;;  %s4927_s29 = smov 128  }
  0x6c   : > { %s4928_s8 = sld [smem:[#allocation29_spill]]  ;;  %s4010_s26 = scalar_lea.vmem %s427_s12, 256 }
  0x6d   : > { %p4011_p3 = scmp.ne.s32.totalorder %s427_s12, %s4010_s26  ;;  %p4018_p0 = scmp.lt.s32.totalorder %s427_s12, %s427_s12 }
  0x6e   : > { %p4019_p2 = scmp.lt.s32.totalorder %s4010_s26, %s4010_s26 }
  0x6f   : > { %p4013_p12 = pnand %p4011_p3, %p4269_p7 }
  0x70   : > { %p4020_p4 = por %p4019_p2, %p4018_p0 }
  0x71   : > { %p4014_p13 = pneg %p4013_p12 }
  0x72   : > { %3654 = dma.hbm_to_vmem [thread:$0]  (!%p4261_p6), %s4928_s8, 8192, %s400_s19, [#allocation12], %s4927_s29, %s4927_s29, %s4926_s14  }
  0x73   : > { %p4021_p5 = pnand %p4020_p4, %p4014_p13 }
  0x75   : > { %4024 = shalt.err (!%p4021_p5)
}
  0x76   : > { %3660 = dma.hbm_to_vmem [thread:$0]  (!%p4261_p6), %s4898_s11, 256, %s427_s12, [#allocation15], %s4927_s29, %s4927_s29, %s4926_s14  }
  0x77   : > { %s3187_s13 = sadd.s32 4294967294, %s4133_s24   ;;  %s4345_s16 = sadd.s32 1, %s4133_s24  }
  0x78   : > { %s36_s30 = ssub.s32 %s4133_s24, %s4345_s16  ;;  %s39_s19 = sadd.s32 1, %s4129_s23 }
  0x79   : > { %p37_p7 = scmp.eq.s32.totalorder %s36_s30, 0  ;;  %p46_p8 = scmp.ne.s32.totalorder %s4129_s23, %s4125_s22 }
  0x7a   : > { %p47_p9 = scmp.eq.s32.totalorder %s4133_s24, 0  ;;  %p52_p11 = scmp.ne.s32.totalorder %s4125_s22, %s4121_s21 }
  0x7b   : > { %s4356_s20 = scalar_select %p37_p7, %s4129_s23, %s39_s19  }
  0x7c   : > { %p4358_p10 = por %p47_p9, %p46_p8  ;;  %p4930_p1 = scmp.eq.s32.totalorder %s4247_s27, 0 }
  0x7d   : > { %p307_p3 = scmp.eq.s32.totalorder %s4247_s27, 1  ;;  %p313_p12 = scmp.eq.s32.totalorder %s3187_s13, 1 }
  0x7e   : > { %p4364_p6 = por %p4930_p1, %p52_p11  ;;  %p3677_p13 = scmp.lt.s32.totalorder %s4133_s24, 2 }
  0x7f   : > { %s440_s15 = sand.u32 1, %s4129_s23   ;;  %p4371_p0 = por %p307_p3, %p46_p8 }
  0x80   : > { %s4931_s12 = scalar_select %p4364_p6, 1, 0 }
  0x81   : > { %s4932_s26 = scalar_select %p4371_p0, 1, 0 }
  0x82   : > { %p4375_p2 = por %p313_p12, %p52_p11  ;;  %s3198_s25 = sshll.u32 %s440_s15, 4 }
  0x83   : > { %s3269_s30 = sshll.u32 %s4133_s24, 8  ;;  %s444_s13 = scalar_lea.vmem [#allocation2], %s3198_s25 }
  0x84   : > { %s4933_s18 = scalar_select %p4375_p2, 1, 0 }
  0x85   : > { %s4383_s3 = scalar_lea.hbm %s4887_s0, %s3269_s30  ;;  %s451_s5 = sshll.u32 %s444_s13, 4  ;;  %s4385_s5 = int_to_ptr.vmem [resolvable:$true] %s451_s5 }
  0x86   : > { %p4389_p4 = pnand %p3677_p13, %p4358_p10  ;;  %s4393_s7 = scalar_lea.sflag [#allocation3], %s440_s15 }
  0x87   : > { %s4025_s8 = scalar_lea.hbm %s4383_s3, 256  ;;  %s4030_s25 = scalar_lea.hbm %s4887_s0, 512 }
  0x88   : > { %p4026_p5 = scmp.ne.s32.totalorder %s4383_s3, %s4025_s8  ;;  %p4027_p7 = pneg %p4389_p4 }
  0x89   : > { %p4031_p11 = scmp.lt.s32.totalorder %s4383_s3, %s4887_s0  ;;  %p4032_p10 = scmp.lt.s32.totalorder %s4030_s25, %s4025_s8 }
  0x8a   : > { %p4028_p8 = pnand %p4027_p7, %p4026_p5 }
  0x8b   : > { %p4033_p1 = por %p4032_p10, %p4031_p11 }
  0x8c   : > { %p4029_p9 = pneg %p4028_p8 }
  0x8e   : > { %p4034_p3 = pnand %p4033_p1, %p4029_p9 }
  0x90   : > { %4037 = shalt.err (!%p4034_p3)
}
  0x91   : > { %s4038_s17 = scalar_lea.vmem %s4385_s5, 256  ;;  %s4149_s15 = smov [#allocation2]  }
  0x92   : > { %p4039_p12 = scmp.ne.s32.totalorder %s4385_s5, %s4038_s17  ;;  %s4043_s9 = sshll.u32 %s4149_s15, 4  ;;  %s4044_s9 = int_to_ptr.vmem [resolvable:$false] %s4043_s9 }
  0x93   : > { %s4045_s2 = scalar_lea.vmem %s4044_s9, 512  ;;  %p4046_p8 = scmp.lt.s32.totalorder %s4385_s5, %s4044_s9 }
  0x94   : > { %p4041_p13 = pnand %p4039_p12, %p4027_p7  ;;  %p4047_p2 = scmp.lt.s32.totalorder %s4045_s2, %s4038_s17 }
  0x96   : > { %p4042_p5 = pneg %p4041_p13  ;;  %p4048_p0 = por %p4047_p2, %p4046_p8 }
  0x98   : > { %p4049_p6 = pnand %p4048_p0, %p4042_p5 }
  0x9a   : > { %4052 = shalt.err (!%p4049_p6)
}
  0x9b   : > { %3664 = dma.hbm_to_vmem [thread:$0]  (!%p4389_p4), %s4383_s3, 256, %s4385_s5, %s4393_s7, %s4927_s29, %s4927_s29, %s4926_s14  }
  0x9c   : > { %p4935_p7 = scmp.ne.s32.totalorder %s4917_s28, 0 }
  0x9d   : > { %s4420_s8 = sand.u32 (!%p4935_p7), 1, %s4125_s22   ;;  %p4936_p6 = scmp.ne.s32.totalorder (!%p4935_p7), %s4931_s12, 0 }
  0x9e   : > { %463 = sbr.rel (%p4935_p7) target bundleno = 4281 (0x10b9), region = 68  ;;  %s3202_s9 = sshll.u32 (!%p4935_p7), %s4420_s8, 4 }
  0x9f   : > { %s466_s30 = scalar_lea.sflag (!%p4935_p7), [#allocation3], %s4420_s8  ;;  %s4426_s6 = scalar_lea.vmem (!%p4935_p7), [#allocation2], %s3202_s9 }
  0xa3   : > { %4096 = dma.done.wait (%p4936_p6), %s466_s30, 256  }
  0xa4   : > { %4098 = vsyncadd (%p4936_p6), %s466_s30, 4294967040  ;;  %p4937_p0 = scmp.eq.s32.totalorder %s4247_s27, 0 }
  0xa6   : > { %4100 = dma.done.wait (%p4937_p0), [#allocation6], 8192   ;;  %p4938_p2 = pmov %p4937_p0 }
  0xa7   : > { %p4939_p4 = pmov %p4937_p0 }
  0xa8   : > { %4102 = vsyncadd (%p4938_p2), [#allocation6], 4294959104 }
  0xa9   : > { %4104 = dma.done.wait (%p4939_p4), [#allocation9], 8208   ;;  %p4940_p9 = pmov %p4937_p0 }
  0xaa   : > { %p4941_p11 = pmov %p4937_p0 }
  0xab   : > { %4106 = vsyncadd (%p4940_p9), [#allocation9], 4294959088 }
  0xac   : > { %4108 = dma.done.wait (%p4941_p11), [#allocation12], 8256   ;;  %p4942_p10 = pmov %p4937_p0 }
  0xad   : > { %p4943_p1 = pmov %p4937_p0 }
  0xae   : > { %4110 = vsyncadd (%p4942_p10), [#allocation12], 4294959040 }
  0xaf   : > { %4112 = dma.done.wait (%p4943_p1), [#allocation15], 272   ;;  %p4944_p3 = pmov %p4937_p0 }
  0xb0   : > { %v4449_v0 = vld [vmem:[%s4426_s6] sm:$0xff]  ;;  %v4452_v1 = vld [vmem:[%s4426_s6 + $0x8] sm:$0xff]  ;;  %v4150_v50 = vmov 0.0   ;;  %s4151_s7 = smov 64   ;;  %vm811_vm0 = vcmask 130048   ;;  %s4152_s25 = smov 112  }
  0xb1   : > { %4114 = vsyncadd (%p4944_p3), [#allocation15], 4294967024  ;;  %v614_v2 = vld [vmem:[#allocation5 + $0x170] sm:$0xff]  ;;  %v545_v3 = vmul.f32 %v4449_v0, %v4449_v0  ;;  %v613_v4 = vld [vmem:[#allocation5 + $0x168] sm:$0xff]  ;;  %v546_v9 = vmul.f32 %v4452_v1, %v4452_v1  ;;  %680 = vmatprep.mubr.f32.mxu0 %v4150_v50  ;;  %s4153_s19 = smov 48   ;;  %s4154_s13 = smov 96  }
  0xb2   : > { %616 = vmatprep.subr.mxu0 %v614_v2  ;;  %v611_v5 = vld [vmem:[#allocation5 + $0x158] sm:$0xff]  ;;  %v610_v6 = vld [vmem:[#allocation5 + $0x150] sm:$0xff]  ;;  %v608_v7 = vld [vmem:[#allocation5 + $0x140] sm:$0xff]  ;;  %s4155_s17 = smov 32   ;;  %vm1386_vm3 = vcmask 261120   ;;  %s4156_s15 = smov 16  }
  0xb3   : > { %617 = vmatpush1.msra.mxu0 %v613_v4  ;;  %v615_v8 = vld [vmem:[#allocation5 + $0x178] sm:$0xff]  ;;  %547 = vadd.xlane.f32.xlu0 %v545_v3  ;;  %v612_v11 = vld [vmem:[#allocation5 + $0x160] sm:$0xff]  ;;  %v605_v12 = vld [vmem:[#allocation5 + $0x128] sm:$0xff]  ;;  %s4157_s2 = smov 80   ;;  %s4945_s29 = sld [smem:[#allocation31_spill]] }
  0xb4   : > { %618 = vmatprep.subr.mxu0 %v611_v5  ;;  %v607_v10 = vld [vmem:[#allocation5 + $0x138] sm:$0xff]  ;;  %3437 = vmatprep.subr.mxu1 %v615_v8  ;;  %v604_v13 = vld [vmem:[#allocation5 + $0x120] sm:$0xff]  ;;  %v602_v14 = vld [vmem:[#allocation5 + $0x110] sm:$0xff]  ;;  %s3025_s12 = scalar_lea.sflag [#allocation4], %s4420_s8  ;;  %p4946_p13 = scmp.ne.s32.totalorder %s4932_s26, 0 }
  0xb5   : > { %619 = vmatpush1.msra.mxu0 %v610_v6  ;;  %3438 = vmatpush3.msra.mxu1 %v615_v8  ;;  %v609_v15 = vld [vmem:[#allocation5 + $0x148] sm:$0xff]  ;;  %v599_v17 = vld [vmem:[#allocation5 + $0xf8] sm:$0xff]  ;;  %v606_v18 = vld [vmem:[#allocation5 + $0x130] sm:$0xff] }
  0xb6   : > { %620 = vmatprep.subr.mxu0 %v608_v7  ;;  %3439 = vmatprep.subr.mxu1 %v612_v11  ;;  %v601_v16 = vld [vmem:[#allocation5 + $0x108] sm:$0xff]  ;;  %v598_v19 = vld [vmem:[#allocation5 + $0xf0] sm:$0xff]  ;;  %v596_v20 = vld [vmem:[#allocation5 + $0xe0] sm:$0xff] }
  0xb7   : > { %621 = vmatpush1.msra.mxu0 %v607_v10  ;;  %549 = vadd.xlane.f32.xlu0 %v546_v9  ;;  %v603_v21 = vld [vmem:[#allocation5 + $0x118] sm:$0xff]  ;;  %v593_v23 = vld [vmem:[#allocation5 + $0xc8] sm:$0xff]  ;;  %v600_v24 = vld [vmem:[#allocation5 + $0x100] sm:$0xff] }
  0xb8   : > { %622 = vmatprep.subr.mxu0 %v605_v12  ;;  %3440 = vmatpush3.msra.mxu1 %v612_v11  ;;  %v595_v22 = vld [vmem:[#allocation5 + $0xd8] sm:$0xff]  ;;  %v592_v25 = vld [vmem:[#allocation5 + $0xc0] sm:$0xff]  ;;  %v590_v26 = vld [vmem:[#allocation5 + $0xb0] sm:$0xff] }
  0xb9   : > { %623 = vmatpush1.msra.mxu0 %v604_v13  ;;  %3441 = vmatprep.subr.mxu1 %v609_v15  ;;  %v597_v27 = vld [vmem:[#allocation5 + $0xe8] sm:$0xff]  ;;  %v587_v29 = vld [vmem:[#allocation5 + $0x98] sm:$0xff]  ;;  %v594_v30 = vld [vmem:[#allocation5 + $0xd0] sm:$0xff] }
  0xba   : > { %624 = vmatprep.subr.mxu0 %v602_v14  ;;  %3442 = vmatpush3.msra.mxu1 %v609_v15  ;;  %v589_v28 = vld [vmem:[#allocation5 + $0xa8] sm:$0xff]  ;;  %v586_v31 = vld [vmem:[#allocation5 + $0x90] sm:$0xff]  ;;  %v584_v32 = vld [vmem:[#allocation5 + $0x80] sm:$0xff] }
  0xbb   : > { %625 = vmatpush1.msra.mxu0 %v601_v16  ;;  %3443 = vmatprep.subr.mxu1 %v606_v18  ;;  %v591_v33 = vld [vmem:[#allocation5 + $0xb8] sm:$0xff]  ;;  %v581_v35 = vld [vmem:[#allocation5 + $0x68] sm:$0xff]  ;;  %v588_v36 = vld [vmem:[#allocation5 + $0xa0] sm:$0xff] }
  0xbc   : > { %626 = vmatprep.subr.mxu0 %v599_v17  ;;  %3444 = vmatpush3.msra.mxu1 %v606_v18  ;;  %v583_v34 = vld [vmem:[#allocation5 + $0x78] sm:$0xff]  ;;  %v580_v37 = vld [vmem:[#allocation5 + $0x60] sm:$0xff]  ;;  %v578_v38 = vld [vmem:[#allocation5 + $0x50] sm:$0xff] }
  0xbd   : > { %627 = vmatpush1.msra.mxu0 %v598_v19  ;;  %3445 = vmatprep.subr.mxu1 %v603_v21  ;;  %v585_v39 = vld [vmem:[#allocation5 + $0x88] sm:$0xff]  ;;  %v575_v41 = vld [vmem:[#allocation5 + $0x38] sm:$0xff]  ;;  %v582_v42 = vld [vmem:[#allocation5 + $0x70] sm:$0xff] }
  0xbe   : > { %628 = vmatprep.subr.mxu0 %v596_v20  ;;  %3446 = vmatpush3.msra.mxu1 %v603_v21  ;;  %v577_v40 = vld [vmem:[#allocation5 + $0x48] sm:$0xff]  ;;  %v574_v43 = vld [vmem:[#allocation5 + $0x30] sm:$0xff]  ;;  %v572_v44 = vld [vmem:[#allocation5 + $0x20] sm:$0xff] }
  0xbf   : > { %629 = vmatpush1.msra.mxu0 %v595_v22  ;;  %3447 = vmatprep.subr.mxu1 %v600_v24  ;;  %v579_v45 = vld [vmem:[#allocation5 + $0x58] sm:$0xff]  ;;  %v569_v47 = vld [vmem:[#allocation5 + $0x8] sm:$0xff]  ;;  %v576_v48 = vld [vmem:[#allocation5 + $0x40] sm:$0xff] }
  0xc0   : > { %630 = vmatprep.subr.mxu0 %v593_v23  ;;  %3448 = vmatpush3.msra.mxu1 %v600_v24  ;;  %v571_v46 = vld [vmem:[#allocation5 + $0x18] sm:$0xff]  ;;  %v568_v49 = vld [vmem:[#allocation5] sm:$0xff]  ;;  %v573_v51 = vld [vmem:[#allocation5 + $0x28] sm:$0xff] }
  0xc1   : > { %631 = vmatpush1.msra.mxu0 %v592_v25  ;;  %3449 = vmatprep.subr.mxu1 %v597_v27  ;;  %v570_v52 = vld [vmem:[#allocation5 + $0x10] sm:$0xff]  ;;  %v3212_v60 = vld [vmem:[%s4888_s1] ss:$0 sm:$0xff]  ;;  %v769_v13 = vld [vmem:[%s4897_s10 + $0x8] sm:$0xff] }
  0xc2   : > { %632 = vmatprep.subr.mxu0 %v590_v26  ;;  %3450 = vmatpush3.msra.mxu1 %v597_v27  ;;  %v771_v12 = vld [vmem:[#allocation16 + $0x8] sm:$0xff] }
  0xc3   : > { %633 = vmatpush1.msra.mxu0 %v589_v28  ;;  %3451 = vmatprep.subr.mxu1 %v594_v30 }
  0xc4   : > { %634 = vmatprep.subr.mxu0 %v587_v29  ;;  %3452 = vmatpush3.msra.mxu1 %v594_v30 }
  0xc5   : > { %635 = vmatpush1.msra.mxu0 %v586_v31  ;;  %3453 = vmatprep.subr.mxu1 %v591_v33 }
  0xc6   : > { %636 = vmatprep.subr.mxu0 %v584_v32  ;;  %3454 = vmatpush3.msra.mxu1 %v591_v33  ;;  %v792_v32 = vlaneseq }
  0xc7   : > { %637 = vmatpush1.msra.mxu0 %v583_v34  ;;  %3455 = vmatprep.subr.mxu1 %v588_v36 }
  0xc8   : > { %638 = vmatprep.subr.mxu0 %v581_v35  ;;  %3456 = vmatpush3.msra.mxu1 %v588_v36  ;;  %v4517_v33 = vshrl.u32 %v792_v32, 7  ;;  %v4522_v35 = vand.u32 127, %v792_v32 }
  0xc9   : > { %639 = vmatpush1.msra.mxu0 %v580_v37  ;;  %3457 = vmatprep.subr.mxu1 %v585_v39 }
  0xca   : > { %640 = vmatprep.subr.mxu0 %v578_v38  ;;  %3458 = vmatpush3.msra.mxu1 %v585_v39  ;;  %v4520_v34 = vadd.s32 8, %v4517_v33  ;;  %vm797_vm2 = vcmp.le.s32.totalorder %v4522_v35, %v4517_v33 }
  0xcb   : > { %641 = vmatpush1.msra.mxu0 %v577_v40  ;;  %3459 = vmatprep.subr.mxu1 %v582_v42 }
  0xcc   : > { %642 = vmatprep.subr.mxu0 %v575_v41  ;;  %3460 = vmatpush3.msra.mxu1 %v582_v42  ;;  %vm798_vm1 = vcmp.le.s32.totalorder %v4522_v35, %v4520_v34 }
  0xcd   : > { %643 = vmatpush1.msra.mxu0 %v574_v43  ;;  %3461 = vmatprep.subr.mxu1 %v579_v45 }
  0xce   : > { %644 = vmatprep.subr.mxu0 %v572_v44  ;;  %3462 = vmatpush3.msra.mxu1 %v579_v45 }
  0xcf   : > { %645 = vmatpush1.msra.mxu0 %v571_v46  ;;  %3463 = vmatprep.subr.mxu1 %v576_v48 }
  0xd0   : > { %646 = vmatprep.subr.mxu0 %v569_v47  ;;  %3464 = vmatpush3.msra.mxu1 %v576_v48 }
  0xd1   : > { %647 = vmatpush1.msra.mxu0 %v568_v49  ;;  %3465 = vmatprep.subr.mxu1 %v573_v51 }
  0xd2   : > { %3466 = vmatpush3.msra.mxu1 %v573_v51 }
  0xd3   : > { %3467 = vmatprep.subr.mxu1 %v570_v52 }
  0xd4   : > { %3468 = vmatpush3.msra.mxu1 %v570_v52 }
 0x13c   : > { %v548_v53 = vpop.xlane.xlu0 %547 }
 0x13d   : > { %v552_v54 = vmul.f32 0.0078125, %v548_v53 }
 0x13f   : > { %v554_v55 = vadd.f32 1e-05, %v552_v54 }
 0x140   : > { %v550_v56 = vpop.xlane.xlu0 %549 }
 0x141   : > { %3743 = vrsqrt.f32 %v554_v55  ;;  %v553_v57 = vmul.f32 0.0078125, %v550_v56 }
 0x143   : > { %v555_v58 = vadd.f32 1e-05, %v553_v57 }
 0x145   : > { %3745 = vrsqrt.f32 %v555_v58 }
 0x14e   : > { %v3744_v59 = vpop.eup %3743 }
 0x14f   : > { %v558_v61 = vmul.f32 %v3744_v59, %v4449_v0  ;;  %v768_v0 = vld [vmem:[%s4897_s10] sm:$0xff] }
 0x151   : > { %v566_v62 = vmul.f32 %v3212_v60, %v558_v61 }
 0x152   : > { %v3746_v63 = vpop.eup %3745 }
 0x153   : > { %681 = vmatmul.mubr.f32.vlgmr.msra.gmra.mxu0 %v566_v62  ;;  %3469 = vmatprep.mubr.f32.mxu1 %v566_v62  ;;  %v559_v2 = vmul.f32 %v3746_v63, %v4452_v1  ;;  %v770_v1 = vld [vmem:[#allocation16] sm:$0xff] }
 0x154   : > { %686 = vmatprep.mubr.f32.mxu0 %v4150_v50 }
 0x155   : > { %v567_v3 = vmul.f32 %v3212_v60, %v559_v2 }
 0x157   : > { %687 = vmatmul.mubr.f32.gmra.mxu0 %v567_v3  ;;  %3470 = vmatmul.mubr.f32.vlgmr.msra.gmra.mxu1 %v567_v3 }
 0x213   : > { %v682_v4 = vpop.f32.mrf.mxu0 }
 0x214   : > { %774 = vrot.lane.b32.xlu0 %v682_v4, %s4151_s7  ;;  %v772_v9 = vmul.f32 %v768_v0, %v682_v4 }
 0x215   : > { %v684_v5 = vpop.f32.mrf.mxu0 }
 0x216   : > { %v782_v19 = vmul.f32 %v768_v0, %v684_v5 }
 0x217   : > { %v688_v6 = vpop.f32.mrf.mxu0  ;;  %v4491_v25 = vpop.f32.mrf.mxu1 }
 0x218   : > { %v773_v23 = vmul.f32 %v769_v13, %v688_v6 }
 0x219   : > { %v690_v7 = vpop.f32.mrf.mxu0  ;;  %v4502_v27 = vpop.f32.mrf.mxu1 }
 0x21a   : > { %786 = vrot.lane.b32.xlu1 %v690_v7, %s4151_s7  ;;  %v783_v15 = vmul.f32 %v769_v13, %v690_v7 }
 0x21e   : > { %784 = vrot.lane.b32.xlu1 %v684_v5, %s4151_s7 }
 0x222   : > { %776 = vrot.lane.b32.xlu1 %v688_v6, %s4151_s7 }
 0x286   : > { %v775_v8 = vpop.permute.xlu0 %774 }
 0x287   : > { %v778_v10 = vmul.f32 %v775_v8, %v770_v1 }
 0x289   : > { %v4472_v11 = vadd.f32 %v778_v10, %v772_v9 }
 0x28b   : > { %3483 = vmatprep.mubr.msk.f32.mxu1 %vm811_vm0, %v4472_v11 }
 0x28c   : > { %v787_v14 = vpop.permute.xlu1 %786 }
 0x28d   : > { %v789_v16 = vmul.f32 %v787_v14, %v771_v12 }
 0x28f   : > { %v4479_v17 = vadd.f32 %v789_v16, %v783_v15 }
 0x290   : > { %v785_v18 = vpop.permute.xlu1 %784 }
 0x291   : > { %v788_v20 = vmul.f32 %v785_v18, %v770_v1  ;;  %3479 = vmatprep.subr.msk.mxu1 %vm811_vm0, %v4479_v17 }
 0x292   : > { %3480 = vmatpush3.xpose.msk.msra.mxu1 %vm811_vm0, %v4479_v17 }
 0x293   : > { %v4485_v21 = vadd.f32 %v788_v20, %v782_v19 }
 0x294   : > { %v777_v22 = vpop.permute.xlu1 %776 }
 0x295   : > { %v779_v24 = vmul.f32 %v777_v22, %v771_v12  ;;  %807 = vrot.lane.b32.xlu1 %v4485_v21, %s4151_s7  ;;  %3481 = vmatprep.subr.msk.mxu1 %vm811_vm0, %v4485_v21 }
 0x296   : > { %3482 = vmatpush3.xpose.msk.msra.mxu1 %vm811_vm0, %v4485_v21 }
 0x297   : > { %v4495_v26 = vadd.f32 %v779_v24, %v773_v23  ;;  %3486 = vmatprep.subr.mxu1 %v4491_v25 }
 0x299   : > { %809 = vrot.lane.b32.xlu1 %v4479_v17, %s4151_s7  ;;  %3484 = vmatmul.mubr.msk.f32.vlgmr.msra.gmra.mxu1 %vm811_vm0, %v4495_v26 }
 0x29a   : > { %3487 = vmatpush3.msra.mxu1 %v4491_v25 }
 0x29b   : > { %3488 = vmatprep.subr.mxu1 %v4502_v27 }
 0x29c   : > { %3489 = vmatpush3.msra.mxu1 %v4502_v27 }
 0x29d   : > { %801 = vrot.lane.b32.xlu1 %v4472_v11, %s4151_s7 }
 0x2a1   : > { %803 = vrot.lane.b32.xlu1 %v4495_v26, %s4151_s7 }
 0x307   : > { %v808_v28 = vpop.permute.xlu1 %807 }
 0x30b   : > { %v810_v29 = vpop.permute.xlu1 %809 }
 0x30c   : > { %3472 = vmatprep.subr.msk.mxu0 %vm811_vm0, %v810_v29 }
 0x30d   : > { %3473 = vmatpush3.xpose.msk.msra.mxu0 %vm811_vm0, %v810_v29 }
 0x30e   : > { %3474 = vmatprep.subr.msk.mxu0 %vm811_vm0, %v808_v28 }
 0x30f   : > { %v802_v30 = vpop.permute.xlu1 %801 }
 0x310   : > { %3476 = vmatprep.mubr.msk.f32.mxu0 %vm811_vm0, %v802_v30 }
 0x311   : > { %3475 = vmatpush3.xpose.msk.msra.mxu0 %vm811_vm0, %v808_v28 }
 0x313   : > { %v804_v31 = vpop.permute.xlu1 %803 }
 0x314   : > { %3477 = vmatmul.mubr.msk.f32.vlgmr.msra.gmra.mxu0 %vm811_vm0, %v804_v31 }
 0x359   : > { %v3485_v36 = vpop.f32.mrf.mxu1 }
 0x35b   : > { %v969_v39 = vpop.f32.mrf.mxu1 }
 0x3d4   : > { %v3478_v37 = vpop.f32.mrf.mxu0 }
 0x3d5   : > { %v975_v38 = vadd.f32 %v3485_v36, %v3478_v37 }
 0x3d6   : > { %v886_v40 = vpop.f32.mrf.mxu0 }
 0x3d7   : > { %v970_v41 = vadd.f32 %v969_v39, %v886_v40  ;;  %v979_v42 = vsel %vm798_vm1, %v975_v38, -inf  ;;  %v1385_v38 = vld [vmem:[#allocation7 + $0x38] sm:$0xff]  ;;  %v1384_v39 = vld [vmem:[#allocation7 + $0x30] sm:$0xff]  ;;  %v1383_v40 = vld [vmem:[#allocation7 + $0x28] sm:$0xff] }
 0x3d8   : > { %v983_v43 = vsel %vm811_vm0, %v979_v42, -inf }
 0x3d9   : > { %984 = vmax.xlane.f32.xlu0 %v983_v43  ;;  %v978_v44 = vsel %vm797_vm2, %v970_v41, -inf  ;;  %v1382_v41 = vld [vmem:[#allocation7 + $0x20] sm:$0xff] }
 0x3da   : > { %v980_v45 = vsel %vm811_vm0, %v978_v44, -inf }
 0x3db   : > { %981 = vmax.xlane.f32.xlu1 %v980_v45 }
 0x3ec   : > { %1184 = vrot.lane.b32.xlu1 %v4479_v17, %s4152_s25 }
 0x3ef   : > { %1093 = vrot.lane.b32.xlu0 %v4479_v17, %s4153_s19 }
 0x3f0   : > { %1091 = vrot.lane.b32.xlu1 %v4485_v21, %s4153_s19 }
 0x462   : > { %v985_v46 = vpop.xlane.xlu0 %984 }
 0x463   : > { %v987_v47 = vsub.f32 %v979_v42, %v985_v46 }
 0x464   : > { %v982_v48 = vpop.xlane.xlu1 %981 }
 0x465   : > { %v990_v49 = vmul.f32 1.442695, %v987_v47  ;;  %v986_v51 = vsub.f32 %v978_v44, %v982_v48  ;;  %v1086_v47 = vld [vmem:[#allocation7 + $0x18] sm:$0xff] }
 0x466   : > { %v1094_v52 = vpop.permute.xlu0 %1093 }
 0x467   : > { %3747 = vpow2.f32 %v990_v49  ;;  %v988_v53 = vmul.f32 1.442695, %v986_v51  ;;  %3493 = vmatprep.subr.msk.mxu1 %vm811_vm0, %v1094_v52 }
 0x468   : > { %v1185_v54 = vpop.permute.xlu1 %1184 }
 0x469   : > { %3749 = vpow2.f32 %v988_v53  ;;  %3500 = vmatprep.subr.msk.mxu0 %vm811_vm0, %v1185_v54 }
 0x46a   : > { %3501 = vmatpush3.xpose.msk.msra.mxu0 %vm811_vm0, %v1185_v54  ;;  %v1085_v54 = vld [vmem:[#allocation7 + $0x10] sm:$0xff] }
 0x46c   : > { %v1092_v59 = vpop.permute.xlu1 %1091 }
 0x474   : > { %v3748_v55 = vpop.eup %3747 }
 0x475   : > { %v995_v56 = vsel %vm811_vm0, %v3748_v55, 0.0 }
 0x476   : > { %v3750_v57 = vpop.eup %3749  ;;  %996 = vadd.xlane.f32.xlu1 %v995_v56 }
 0x477   : > { %v992_v58 = vsel %vm811_vm0, %v3750_v57, 0.0 }
 0x478   : > { %993 = vadd.xlane.f32.xlu0 %v992_v58 }
 0x487   : > { %1087 = vrot.lane.b32.xlu1 %v4472_v11, %s4153_s19 }
 0x48b   : > { %1089 = vrot.lane.b32.xlu1 %v4495_v26, %s4153_s19 }
 0x48e   : > { %1182 = vrot.lane.b32.xlu0 %v4485_v21, %s4152_s25 }
 0x492   : > { %1178 = vrot.lane.b32.xlu0 %v4472_v11, %s4152_s25 }
 0x496   : > { %1180 = vrot.lane.b32.xlu0 %v4495_v26, %s4152_s25 }
 0x4ff   : > { %v997_v60 = vpop.xlane.xlu1 %996 }
 0x500   : > { %3751 = vrcp.f32 %v997_v60 }
 0x501   : > { %v994_v61 = vpop.xlane.xlu0 %993 }
 0x502   : > { %3753 = vrcp.f32 %v994_v61 }
 0x503   : > { %v1088_v7 = vpop.permute.xlu1 %1087 }
 0x505   : > { %v1183_v62 = vpop.permute.xlu0 %1182 }
 0x506   : > { %3502 = vmatprep.subr.msk.mxu0 %vm811_vm0, %v1183_v62 }
 0x507   : > { %3503 = vmatpush3.xpose.msk.msra.mxu0 %vm811_vm0, %v1183_v62  ;;  %v1090_v0 = vpop.permute.xlu1 %1089 }
 0x508   : > { %3514 = vmatprep.subr.mxu0 %v1385_v38 }
 0x509   : > { %v1179_v63 = vpop.permute.xlu0 %1178 }
 0x50a   : > { %3504 = vmatprep.mubr.msk.f32.mxu0 %vm811_vm0, %v1179_v63 }
 0x50d   : > { %v1181_v2 = vpop.permute.xlu0 %1180  ;;  %v3752_v3 = vpop.eup %3751 }
 0x50e   : > { %3505 = vmatmul.mubr.msk.f32.vlgmr.msra.gmra.mxu0 %vm811_vm0, %v1181_v2  ;;  %v1001_v6 = vmul.f32 %v3752_v3, %v3748_v55  ;;  %v1084_v55 = vld [vmem:[#allocation7 + $0x8] sm:$0xff] }
 0x50f   : > { %v3754_v4 = vpop.eup %3753  ;;  %3515 = vmatpush3.msra.mxu0 %v1385_v38 }
 0x510   : > { %v1000_v5 = vmul.f32 %v3754_v4, %v3750_v57  ;;  %3516 = vmatprep.subr.mxu0 %v1384_v39  ;;  %v1083_v57 = vld [vmem:[#allocation7] sm:$0xff] }
 0x511   : > { %3517 = vmatpush3.msra.mxu0 %v1384_v39 }
 0x512   : > { %3490 = vmatprep.mubr.msk.f32.mxu1 %vm811_vm0, %v1000_v5  ;;  %3518 = vmatprep.subr.mxu0 %v1383_v40 }
 0x513   : > { %3491 = vmatmul.mubr.msk.f32.vlgmr.msra.gmra.mxu1 %vm811_vm0, %v1001_v6  ;;  %3519 = vmatpush3.msra.mxu0 %v1383_v40 }
 0x514   : > { %3494 = vmatpush3.xpose.msk.msra.mxu1 %vm811_vm0, %v1094_v52  ;;  %3497 = vmatprep.mubr.msk.f32.mxu1 %vm811_vm0, %v1088_v7 }
 0x515   : > { %3495 = vmatprep.subr.msk.mxu1 %vm811_vm0, %v1092_v59  ;;  %3520 = vmatprep.subr.mxu0 %v1382_v41 }
 0x516   : > { %3521 = vmatpush3.msra.mxu0 %v1382_v41 }
 0x518   : > { %3496 = vmatpush3.xpose.msk.msra.mxu1 %vm811_vm0, %v1092_v59 }
 0x51b   : > { %3498 = vmatmul.mubr.msk.f32.vlgmr.msra.gmra.mxu1 %vm811_vm0, %v1090_v0 }
 0x5ce   : > { %v3506_v8 = vpop.f32.mrf.mxu0 }
 0x5d0   : > { %v1260_v13 = vpop.f32.mrf.mxu0 }
 0x5d3   : > { %v4560_v1 = vpop.f32.mrf.mxu1 }
 0x5d5   : > { %v4562_v9 = vpop.f32.mrf.mxu1 }
 0x5db   : > { %v3499_v10 = vpop.f32.mrf.mxu1 }
 0x5dc   : > { %v1266_v12 = vadd.f32 %v3506_v8, %v3499_v10 }
 0x5dd   : > { %v1169_v14 = vpop.f32.mrf.mxu1 }
 0x5de   : > { %v1261_v15 = vadd.f32 %v1260_v13, %v1169_v14  ;;  %v1270_v16 = vsel %vm798_vm1, %v1266_v12, -inf }
 0x5df   : > { %v1274_v18 = vsel %vm811_vm0, %v1270_v16, -inf }
 0x5e0   : > { %1275 = vmax.xlane.f32.xlu0 %v1274_v18  ;;  %v1269_v19 = vsel %vm797_vm2, %v1261_v15, -inf }
 0x5e1   : > { %v1271_v20 = vsel %vm811_vm0, %v1269_v19, -inf }
 0x5e2   : > { %1272 = vmax.xlane.f32.xlu1 %v1271_v20 }
 0x669   : > { %v1276_v22 = vpop.xlane.xlu0 %1275 }
 0x66a   : > { %v1278_v23 = vsub.f32 %v1270_v16, %v1276_v22 }
 0x66b   : > { %v1273_v24 = vpop.xlane.xlu1 %1272 }
 0x66c   : > { %v1281_v28 = vmul.f32 1.442695, %v1278_v23  ;;  %v1277_v29 = vsub.f32 %v1269_v19, %v1273_v24 }
 0x66e   : > { %3755 = vpow2.f32 %v1281_v28  ;;  %v1279_v30 = vmul.f32 1.442695, %v1277_v29 }
 0x670   : > { %3757 = vpow2.f32 %v1279_v30 }
 0x67b   : > { %v3756_v31 = vpop.eup %3755 }
 0x67c   : > { %v1286_v32 = vsel %vm811_vm0, %v3756_v31, 0.0 }
 0x67d   : > { %v3758_v36 = vpop.eup %3757  ;;  %1287 = vadd.xlane.f32.xlu1 %v1286_v32  ;;  %v1844_v32 = vld [vmem:[#allocation7 + $0x50] sm:$0xff] }
 0x67e   : > { %v1283_v37 = vsel %vm811_vm0, %v3758_v36, 0.0 }
 0x67f   : > { %1284 = vadd.xlane.f32.xlu0 %v1283_v37  ;;  %v1842_v37 = vld [vmem:[#allocation7 + $0x40] sm:$0xff] }
 0x68e   : > { %1295 = vrot.lane.b32.xlu1 %v4502_v27, %s4154_s13 }
 0x692   : > { %1555 = vrot.lane.b32.xlu1 %v4479_v17, %s4155_s17 }
 0x695   : > { %1297 = vrot.lane.b32.xlu0 %v4491_v25, %s4154_s13 }
 0x696   : > { %1553 = vrot.lane.b32.xlu1 %v4485_v21, %s4155_s17 }
 0x699   : > { %1646 = vrot.lane.b32.xlu0 %v4479_v17, %s4154_s13 }
 0x69a   : > { %1549 = vrot.lane.b32.xlu1 %v4472_v11, %s4155_s17 }
 0x69d   : > { %1644 = vrot.lane.b32.xlu0 %v4485_v21, %s4154_s13 }
 0x69e   : > { %1551 = vrot.lane.b32.xlu1 %v4495_v26, %s4155_s17 }
 0x6a1   : > { %1640 = vrot.lane.b32.xlu0 %v4472_v11, %s4154_s13 }
 0x6a5   : > { %1642 = vrot.lane.b32.xlu0 %v4495_v26, %s4154_s13 }
 0x706   : > { %v1288_v42 = vpop.xlane.xlu1 %1287 }
 0x707   : > { %3759 = vrcp.f32 %v1288_v42 }
 0x708   : > { %v1285_v43 = vpop.xlane.xlu0 %1284 }
 0x709   : > { %3761 = vrcp.f32 %v1285_v43 }
 0x70a   : > { %v1296_v44 = vpop.permute.xlu1 %1295 }
 0x70c   : > { %v1298_v45 = vpop.permute.xlu0 %1297 }
 0x70d   : > { %3507 = vmatprep.subr.mxu1 %v1298_v45 }
 0x70e   : > { %3508 = vmatpush3.msra.mxu1 %v1298_v45  ;;  %v1556_v46 = vpop.permute.xlu1 %1555 }
 0x70f   : > { %3509 = vmatprep.subr.mxu1 %v1296_v44  ;;  %3536 = vmatprep.subr.msk.mxu0 %vm811_vm0, %v1556_v46 }
 0x710   : > { %3510 = vmatpush3.msra.mxu1 %v1296_v44  ;;  %v1647_v51 = vpop.permute.xlu0 %1646 }
 0x711   : > { %3525 = vmatprep.subr.mxu1 %v1086_v47 }
 0x712   : > { %v1554_v60 = vpop.permute.xlu1 %1553 }
 0x714   : > { %v3760_v48 = vpop.eup %3759  ;;  %v1645_v56 = vpop.permute.xlu0 %1644 }
 0x715   : > { %v1292_v53 = vmul.f32 %v3760_v48, %v3756_v31  ;;  %v1845_v31 = vld [vmem:[#allocation7 + $0x58] sm:$0xff] }
 0x716   : > { %v3762_v49 = vpop.eup %3761  ;;  %v1550_v63 = vpop.permute.xlu1 %1549 }
 0x717   : > { %v1291_v52 = vmul.f32 %v3762_v49, %v3758_v36  ;;  %v1843_v36 = vld [vmem:[#allocation7 + $0x48] sm:$0xff] }
 0x718   : > { %v1641_v58 = vpop.permute.xlu0 %1640 }
 0x719   : > { %3511 = vmatprep.mubr.msk.f32.mxu1 %vm811_vm0, %v1291_v52 }
 0x71a   : > { %3512 = vmatmul.mubr.msk.f32.vlgmr.msra.gmra.mxu1 %vm811_vm0, %v1292_v53  ;;  %v1552_v2 = vpop.permute.xlu1 %1551 }
 0x71b   : > { %3526 = vmatpush3.msra.mxu1 %v1086_v47  ;;  %3533 = vmatprep.mubr.msk.f32.mxu1 %vm1386_vm3, %v4562_v9 }
 0x71c   : > { %3527 = vmatprep.subr.mxu1 %v1085_v54  ;;  %v1643_v59 = vpop.permute.xlu0 %1642 }
 0x71d   : > { %3528 = vmatpush3.msra.mxu1 %v1085_v54 }
 0x71e   : > { %3529 = vmatprep.subr.mxu1 %v1084_v55 }
 0x71f   : > { %3530 = vmatpush3.msra.mxu1 %v1084_v55 }
 0x720   : > { %3531 = vmatprep.subr.mxu1 %v1083_v57 }
 0x721   : > { %3532 = vmatpush3.msra.mxu1 %v1083_v57 }
 0x722   : > { %3534 = vmatmul.mubr.msk.f32.vlgmr.msra.gmra.mxu1 %vm1386_vm3, %v4560_v1  ;;  %3543 = vmatprep.subr.msk.mxu1 %vm811_vm0, %v1647_v51 }
 0x723   : > { %3544 = vmatpush3.xpose.msk.msra.mxu1 %vm811_vm0, %v1647_v51  ;;  %3547 = vmatprep.mubr.msk.f32.mxu1 %vm811_vm0, %v1641_v58 }
 0x724   : > { %3545 = vmatprep.subr.msk.mxu1 %vm811_vm0, %v1645_v56 }
 0x727   : > { %3546 = vmatpush3.xpose.msk.msra.mxu1 %vm811_vm0, %v1645_v56 }
 0x728   : > { %3557 = vmatprep.subr.mxu1 %v1845_v31 }
 0x72a   : > { %3548 = vmatmul.mubr.msk.f32.vlgmr.msra.gmra.mxu1 %vm811_vm0, %v1643_v59 }
 0x72b   : > { %3558 = vmatpush3.msra.mxu1 %v1845_v31  ;;  %v2404_v31 = vld [vmem:[#allocation10 + $0x1e8] sm:$0xff] }
 0x72c   : > { %3559 = vmatprep.subr.mxu1 %v1844_v32 }
 0x72d   : > { %3560 = vmatpush3.msra.mxu1 %v1844_v32  ;;  %v2406_v32 = vld [vmem:[#allocation10 + $0x1f8] sm:$0xff] }
 0x72e   : > { %3561 = vmatprep.subr.mxu1 %v1843_v36 }
 0x72f   : > { %3562 = vmatpush3.msra.mxu1 %v1843_v36  ;;  %v2403_v36 = vld [vmem:[#allocation10 + $0x1e0] sm:$0xff] }
 0x730   : > { %3563 = vmatprep.subr.mxu1 %v1842_v37 }
 0x731   : > { %3564 = vmatpush3.msra.mxu1 %v1842_v37  ;;  %v2405_v37 = vld [vmem:[#allocation10 + $0x1f0] sm:$0xff] }
 0x7da   : > { %v3513_v61 = vpop.f32.mrf.mxu1 }
 0x7dc   : > { %v1373_v62 = vpop.f32.mrf.mxu1 }
 0x7dd   : > { %3522 = vmatprep.mubr.msk.f32.mxu0 %vm1386_vm3, %v1373_v62 }
 0x7de   : > { %3523 = vmatmul.mubr.msk.f32.vlgmr.msra.gmra.mxu0 %vm1386_vm3, %v3513_v61 }
 0x7df   : > { %3537 = vmatpush3.xpose.msk.msra.mxu0 %vm811_vm0, %v1556_v46  ;;  %3540 = vmatprep.mubr.msk.f32.mxu0 %vm811_vm0, %v1550_v63 }
 0x7e0   : > { %3538 = vmatprep.subr.msk.mxu0 %vm811_vm0, %v1554_v60 }
 0x7e2   : > { %v4608_v3 = vpop.f32.mrf.mxu1 }
 0x7e3   : > { %3539 = vmatpush3.xpose.msk.msra.mxu0 %vm811_vm0, %v1554_v60 }
 0x7e4   : > { %v4612_v5 = vpop.f32.mrf.mxu1 }
 0x7e6   : > { %3541 = vmatmul.mubr.msk.f32.vlgmr.msra.gmra.mxu0 %vm811_vm0, %v1552_v2 }
 0x7ea   : > { %v3549_v6 = vpop.f32.mrf.mxu1 }
 0x7ec   : > { %v1722_v8 = vpop.f32.mrf.mxu1 }
 0x89e   : > { %v4610_v4 = vpop.f32.mrf.mxu0 }
 0x89f   : > { %v1546_v53 = vadd.f32 %v4608_v3, %v4610_v4 }
 0x8a0   : > { %v4614_v7 = vpop.f32.mrf.mxu0 }
 0x8a1   : > { %v1541_v55 = vadd.f32 %v4612_v5, %v4614_v7 }
 0x8a6   : > { %v3542_v0 = vpop.f32.mrf.mxu0 }
 0x8a7   : > { %v1728_v1 = vadd.f32 %v3549_v6, %v3542_v0 }
 0x8a8   : > { %v1631_v9 = vpop.f32.mrf.mxu0 }
 0x8a9   : > { %v1723_v10 = vadd.f32 %v1722_v8, %v1631_v9  ;;  %v1732_v12 = vsel %vm798_vm1, %v1728_v1, -inf }
 0x8aa   : > { %v1736_v13 = vsel %vm811_vm0, %v1732_v12, -inf }
 0x8ab   : > { %1737 = vmax.xlane.f32.xlu0 %v1736_v13  ;;  %v1731_v14 = vsel %vm797_vm2, %v1723_v10, -inf }
 0x8ac   : > { %v1733_v15 = vsel %vm811_vm0, %v1731_v14, -inf }
 0x8ad   : > { %1734 = vmax.xlane.f32.xlu1 %v1733_v15 }
 0x934   : > { %v1738_v16 = vpop.xlane.xlu0 %1737 }
 0x935   : > { %v1740_v18 = vsub.f32 %v1732_v12, %v1738_v16 }
 0x936   : > { %v1735_v19 = vpop.xlane.xlu1 %1734 }
 0x937   : > { %v1743_v20 = vmul.f32 1.442695, %v1740_v18  ;;  %v1739_v22 = vsub.f32 %v1731_v14, %v1735_v19  ;;  %v2225_v19 = vld [vmem:[#allocation7 + $0x78] sm:$0xff] }
 0x939   : > { %3763 = vpow2.f32 %v1743_v20  ;;  %v1741_v23 = vmul.f32 1.442695, %v1739_v22 }
 0x93b   : > { %3765 = vpow2.f32 %v1741_v23 }
 0x946   : > { %v3764_v24 = vpop.eup %3763 }
 0x947   : > { %v1748_v28 = vsel %vm811_vm0, %v3764_v24, 0.0 }
 0x948   : > { %v3766_v29 = vpop.eup %3765  ;;  %1749 = vadd.xlane.f32.xlu1 %v1748_v28  ;;  %v2222_v28 = vld [vmem:[#allocation7 + $0x60] sm:$0xff] }
 0x949   : > { %v1745_v30 = vsel %vm811_vm0, %v3766_v29, 0.0 }
 0x94a   : > { %1746 = vadd.xlane.f32.xlu0 %v1745_v30 }
 0x959   : > { %1755 = vrot.lane.b32.xlu1 %v4502_v27, %s4151_s7 }
 0x95d   : > { %1935 = vrot.lane.b32.xlu1 %v4479_v17, %s4156_s15 }
 0x960   : > { %1757 = vrot.lane.b32.xlu0 %v4491_v25, %s4151_s7  ;;  %s3270_s7 = sshll.u32 %s4247_s27, 8  ;;  %s4158_s27 = smov [#allocation17]  }
 0x961   : > { %1933 = vrot.lane.b32.xlu1 %v4485_v21, %s4156_s15  ;;  %s4057_s19 = sshll.u32 %s4158_s27, 4  ;;  %s4058_s19 = int_to_ptr.vmem [resolvable:$false] %s4057_s19 }
 0x962   : > { %s4059_s13 = scalar_lea.vmem %s4058_s19, 512 }
 0x964   : > { %2026 = vrot.lane.b32.xlu0 %v4479_v17, %s4157_s2 }
 0x965   : > { %1929 = vrot.lane.b32.xlu1 %v4472_v11, %s4156_s15 }
 0x968   : > { %2024 = vrot.lane.b32.xlu0 %v4485_v21, %s4157_s2 }
 0x969   : > { %1931 = vrot.lane.b32.xlu1 %v4495_v26, %s4156_s15 }
 0x96c   : > { %2020 = vrot.lane.b32.xlu0 %v4472_v11, %s4157_s2 }
 0x970   : > { %2022 = vrot.lane.b32.xlu0 %v4495_v26, %s4157_s2 }
 0x9d1   : > { %v1750_v38 = vpop.xlane.xlu1 %1749 }
 0x9d2   : > { %3767 = vrcp.f32 %v1750_v38  ;;  %v2400_v38 = vld [vmem:[#allocation10 + $0x1c8] sm:$0xff] }
 0x9d3   : > { %v1747_v39 = vpop.xlane.xlu0 %1746 }
 0x9d4   : > { %3769 = vrcp.f32 %v1747_v39  ;;  %v2402_v39 = vld [vmem:[#allocation10 + $0x1d8] sm:$0xff] }
 0x9d5   : > { %v1756_v40 = vpop.permute.xlu1 %1755 }
 0x9d7   : > { %v1758_v41 = vpop.permute.xlu0 %1757 }
 0x9d8   : > { %3550 = vmatprep.subr.mxu0 %v1758_v41 }
 0x9d9   : > { %3551 = vmatpush3.msra.mxu0 %v1758_v41  ;;  %v1936_v42 = vpop.permute.xlu1 %1935  ;;  %v2401_v41 = vld [vmem:[#allocation10 + $0x1d0] sm:$0xff] }
 0x9da   : > { %3552 = vmatprep.subr.mxu0 %v1756_v40 }
 0x9db   : > { %v2027_v17 = vpop.permute.xlu0 %2026  ;;  %3553 = vmatpush3.msra.mxu0 %v1756_v40  ;;  %v2399_v40 = vld [vmem:[#allocation10 + $0x1c0] sm:$0xff] }
 0x9dc   : > { %3568 = vmatprep.subr.msk.mxu0 %vm811_vm0, %v1936_v42  ;;  %3575 = vmatprep.subr.msk.mxu1 %vm811_vm0, %v2027_v17 }
 0x9dd   : > { %v1934_v21 = vpop.permute.xlu1 %1933 }
 0x9df   : > { %v3768_v11 = vpop.eup %3767  ;;  %v2025_v47 = vpop.permute.xlu0 %2024 }
 0x9e0   : > { %v1754_v44 = vmul.f32 %v3768_v11, %v3764_v24  ;;  %v2397_v11 = vld [vmem:[#allocation10 + $0x1b0] sm:$0xff] }
 0x9e1   : > { %v3770_v43 = vpop.eup %3769  ;;  %v1930_v45 = vpop.permute.xlu1 %1929 }
 0x9e2   : > { %v1753_v26 = vmul.f32 %v3770_v43, %v3766_v29  ;;  %v2392_v43 = vld [vmem:[#allocation10 + $0x188] sm:$0xff] }
 0x9e3   : > { %v2021_v51 = vpop.permute.xlu0 %2020 }
 0x9e4   : > { %3554 = vmatprep.mubr.msk.f32.mxu0 %vm811_vm0, %v1753_v26  ;;  %v2394_v26 = vld [vmem:[#allocation10 + $0x198] sm:$0xff] }
 0x9e5   : > { %3555 = vmatmul.mubr.msk.f32.vlgmr.msra.gmra.mxu0 %vm811_vm0, %v1754_v44  ;;  %v1932_v46 = vpop.permute.xlu1 %1931  ;;  %v2391_v44 = vld [vmem:[#allocation10 + $0x180] sm:$0xff] }
 0x9e6   : > { %3569 = vmatpush3.xpose.msk.msra.mxu0 %vm811_vm0, %v1936_v42  ;;  %3572 = vmatprep.mubr.msk.f32.mxu0 %vm811_vm0, %v1930_v45  ;;  %v2396_v42 = vld [vmem:[#allocation10 + $0x1a8] sm:$0xff]  ;;  %v2393_v45 = vld [vmem:[#allocation10 + $0x190] sm:$0xff] }
 0x9e7   : > { %3570 = vmatprep.subr.msk.mxu0 %vm811_vm0, %v1934_v21  ;;  %v2023_v52 = vpop.permute.xlu0 %2022 }
 0x9ea   : > { %3571 = vmatpush3.xpose.msk.msra.mxu0 %vm811_vm0, %v1934_v21  ;;  %v2395_v21 = vld [vmem:[#allocation10 + $0x1a0] sm:$0xff] }
 0x9ed   : > { %3573 = vmatmul.mubr.msk.f32.vlgmr.msra.gmra.mxu0 %vm811_vm0, %v1932_v46 }
 0xaa5   : > { %v3556_v48 = vpop.f32.mrf.mxu0 }
 0xaa7   : > { %v1833_v49 = vpop.f32.mrf.mxu0 }
 0xaa8   : > { %3565 = vmatprep.mubr.msk.f32.mxu1 %vm1386_vm3, %v1833_v49 }
 0xaa9   : > { %3566 = vmatmul.mubr.msk.f32.vlgmr.msra.gmra.mxu1 %vm1386_vm3, %v3556_v48  ;;  %v3261_v48 = vld [vmem:[%s4891_s4] ss:$0 sm:$0xff] }
 0xaaa   : > { %3576 = vmatpush3.xpose.msk.msra.mxu1 %vm811_vm0, %v2027_v17  ;;  %3579 = vmatprep.mubr.msk.f32.mxu1 %vm811_vm0, %v2021_v51  ;;  %v2398_v17 = vld [vmem:[#allocation10 + $0x1b8] sm:$0xff] }
 0xaab   : > { %3577 = vmatprep.subr.msk.mxu1 %vm811_vm0, %v2025_v47  ;;  %v3815_v51 = vld [vmem:[%s4426_s6 + $0x8] sm:$0xff] }
 0xaad   : > { %v3574_v59 = vpop.f32.mrf.mxu0 }
 0xaae   : > { %3578 = vmatpush3.xpose.msk.msra.mxu1 %vm811_vm0, %v2025_v47 }
 0xaaf   : > { %v2011_v62 = vpop.f32.mrf.mxu0  ;;  %2429 = vmatprep.subr.mxu1 %v2404_v31  ;;  %v2358_v31 = vld [vmem:[#allocation10 + $0x78] sm:$0xff] }
 0xab1   : > { %3580 = vmatmul.mubr.msk.f32.vlgmr.msra.gmra.mxu1 %vm811_vm0, %v2023_v52 }
 0xab2   : > { %2493 = vmatprep.mubr.f32.mxu1 %v4150_v50  ;;  %2430 = vmatpush1.msra.mxu1 %v2403_v36  ;;  %v2357_v36 = vld [vmem:[#allocation10 + $0x70] sm:$0xff] }
 0xab3   : > { %2431 = vmatprep.subr.mxu1 %v2400_v38  ;;  %v2354_v38 = vld [vmem:[#allocation10 + $0x58] sm:$0xff] }
 0xab4   : > { %2432 = vmatpush1.msra.mxu1 %v2399_v40  ;;  %v2353_v40 = vld [vmem:[#allocation10 + $0x50] sm:$0xff] }
 0xab5   : > { %2433 = vmatprep.subr.mxu1 %v2396_v42  ;;  %v2350_v42 = vld [vmem:[#allocation10 + $0x38] sm:$0xff] }
 0xab6   : > { %2434 = vmatpush1.msra.mxu1 %v2395_v21  ;;  %v2349_v21 = vld [vmem:[#allocation10 + $0x30] sm:$0xff] }
 0xab7   : > { %2435 = vmatprep.subr.mxu1 %v2392_v43  ;;  %v2346_v43 = vld [vmem:[#allocation10 + $0x18] sm:$0xff] }
 0xab8   : > { %2436 = vmatpush1.msra.mxu1 %v2391_v44  ;;  %v2345_v44 = vld [vmem:[#allocation10 + $0x10] sm:$0xff] }
 0xb69   : > { %v3567_v54 = vpop.f32.mrf.mxu1 }
 0xb6a   : > { %v4659_v56 = vadd.f32 %v3567_v54, %v1546_v53 }
 0xb6b   : > { %v1918_v57 = vpop.f32.mrf.mxu1 }
 0xb6c   : > { %v4661_v58 = vadd.f32 %v1918_v57, %v1541_v55  ;;  %v3816_v55 = vld [vmem:[%s4426_s6] sm:$0xff]  ;;  %s541_s6 = scalar_lea.vmem [#allocation17], %s3202_s9  ;;  %s4843_s9 = scalar_lea.hbm %s4945_s29, %s3270_s7 }
 0xb6d   : > { %s3038_s5 = sshll.u32 %s541_s6, 4  ;;  %s4838_s5 = int_to_ptr.vmem [resolvable:$true] %s3038_s5 }
 0xb6e   : > { %s4053_s25 = scalar_lea.vmem %s4838_s5, 256  ;;  %p4060_p7 = scmp.lt.s32.totalorder %s4838_s5, %s4058_s19 }
 0xb6f   : > { %p4054_p12 = scmp.ne.s32.totalorder %s4838_s5, %s4053_s25  ;;  %p4061_p6 = scmp.lt.s32.totalorder %s4059_s13, %s4053_s25 }
 0xb71   : > { %v3581_v60 = vpop.f32.mrf.mxu1  ;;  %p4055_p5 = pnand %p4054_p12, %p4946_p13  ;;  %p4062_p0 = por %p4061_p6, %p4060_p7 }
 0xb72   : > { %v2108_v61 = vadd.f32 %v3581_v60, %v3574_v59 }
 0xb73   : > { %v2102_v63 = vpop.f32.mrf.mxu1  ;;  %p4056_p8 = pneg %p4055_p5 }
 0xb74   : > { %v2103_v2 = vadd.f32 %v2102_v63, %v2011_v62  ;;  %v2112_v6 = vsel %vm798_vm1, %v2108_v61, -inf  ;;  %v2388_v61 = vld [vmem:[#allocation10 + $0x168] sm:$0xff]  ;;  %v2390_v62 = vld [vmem:[#allocation10 + $0x178] sm:$0xff]  ;;  %v2387_v63 = vld [vmem:[#allocation10 + $0x160] sm:$0xff] }
 0xb75   : > { %v2116_v3 = vsel %vm811_vm0, %v2112_v6, -inf  ;;  %2437 = vmatprep.subr.mxu1 %v2388_v61  ;;  %p4063_p2 = pnand %p4062_p0, %p4056_p8 }
 0xb76   : > { %2117 = vmax.xlane.f32.xlu0 %v2116_v3  ;;  %v2111_v4 = vsel %vm797_vm2, %v2103_v2, -inf  ;;  %2438 = vmatpush1.msra.mxu1 %v2387_v63  ;;  %v2384_v2 = vld [vmem:[#allocation10 + $0x148] sm:$0xff]  ;;  %v2383_v3 = vld [vmem:[#allocation10 + $0x140] sm:$0xff] }
 0xb77   : > { %v2113_v5 = vsel %vm811_vm0, %v2111_v4, -inf  ;;  %2439 = vmatprep.subr.mxu1 %v2384_v2  ;;  %v2862_v63 = vld [vmem:[#allocation13 + $0x1f8] sm:$0xff] }
 0xb78   : > { %2114 = vmax.xlane.f32.xlu1 %v2113_v5  ;;  %2440 = vmatpush1.msra.mxu1 %v2383_v3  ;;  %v2380_v5 = vld [vmem:[#allocation10 + $0x128] sm:$0xff]  ;;  %v2846_v2 = vld [vmem:[#allocation13 + $0x178] sm:$0xff]  ;;  %v2861_v3 = vld [vmem:[#allocation13 + $0x1f0] sm:$0xff] }
 0xb79   : > { %2441 = vmatprep.subr.mxu1 %v2380_v5  ;;  %v2845_v5 = vld [vmem:[#allocation13 + $0x170] sm:$0xff] }
 0xbff   : > { %v2118_v7 = vpop.xlane.xlu0 %2117 }
 0xc00   : > { %v2120_v0 = vsub.f32 %v2112_v6, %v2118_v7  ;;  %v2386_v6 = vld [vmem:[#allocation10 + $0x158] sm:$0xff] }
 0xc01   : > { %v2115_v1 = vpop.xlane.xlu1 %2114  ;;  %v2382_v7 = vld [vmem:[#allocation10 + $0x138] sm:$0xff] }
 0xc02   : > { %v2123_v8 = vmul.f32 1.442695, %v2120_v0  ;;  %v2119_v9 = vsub.f32 %v2111_v4, %v2115_v1  ;;  %v2385_v4 = vld [vmem:[#allocation10 + $0x150] sm:$0xff]  ;;  %v2379_v0 = vld [vmem:[#allocation10 + $0x120] sm:$0xff] }
 0xc03   : > { %v2381_v1 = vld [vmem:[#allocation10 + $0x130] sm:$0xff]  ;;  %2442 = vmatpush1.msra.mxu1 %v2379_v0 }
 0xc04   : > { %3771 = vpow2.f32 %v2123_v8  ;;  %v2121_v10 = vmul.f32 1.442695, %v2119_v9  ;;  %v2376_v8 = vld [vmem:[#allocation10 + $0x108] sm:$0xff]  ;;  %v2378_v9 = vld [vmem:[#allocation10 + $0x118] sm:$0xff] }
 0xc05   : > { %2443 = vmatprep.subr.mxu1 %v2376_v8  ;;  %v2812_v0 = vld [vmem:[#allocation13 + $0x68] sm:$0xff]  ;;  %v2827_v8 = vld [vmem:[#allocation13 + $0xe0] sm:$0xff] }
 0xc06   : > { %3773 = vpow2.f32 %v2121_v10  ;;  %v2375_v10 = vld [vmem:[#allocation10 + $0x100] sm:$0xff] }
 0xc07   : > { %2444 = vmatpush1.msra.mxu1 %v2375_v10  ;;  %v2811_v10 = vld [vmem:[#allocation13 + $0x60] sm:$0xff] }
 0xc11   : > { %v3772_v34 = vpop.eup %3771 }
 0xc12   : > { %v2128_v12 = vsel %vm811_vm0, %v3772_v34, 0.0 }
 0xc13   : > { %v3774_v13 = vpop.eup %3773  ;;  %2129 = vadd.xlane.f32.xlu1 %v2128_v12  ;;  %v2372_v12 = vld [vmem:[#allocation10 + $0xe8] sm:$0xff] }
 0xc14   : > { %v2125_v14 = vsel %vm811_vm0, %v3774_v13, 0.0  ;;  %2445 = vmatprep.subr.mxu1 %v2372_v12  ;;  %v2826_v12 = vld [vmem:[#allocation13 + $0xd8] sm:$0xff] }
 0xc15   : > { %2126 = vadd.xlane.f32.xlu0 %v2125_v14  ;;  %v2371_v14 = vld [vmem:[#allocation10 + $0xe0] sm:$0xff] }
 0xc16   : > { %2446 = vmatpush1.msra.mxu1 %v2371_v14  ;;  %v2810_v14 = vld [vmem:[#allocation13 + $0x58] sm:$0xff] }
 0xc24   : > { %2135 = vrot.lane.b32.xlu1 %v4502_v27, %s4155_s17  ;;  %v2224_v27 = vld [vmem:[#allocation7 + $0x70] sm:$0xff] }
 0xc2b   : > { %2137 = vrot.lane.b32.xlu0 %v4491_v25, %s4155_s17  ;;  %v2223_v25 = vld [vmem:[#allocation7 + $0x68] sm:$0xff] }
 0xc9c   : > { %v2130_v35 = vpop.xlane.xlu1 %2129 }
 0xc9d   : > { %3775 = vrcp.f32 %v2130_v35  ;;  %v2373_v35 = vld [vmem:[#allocation10 + $0xf0] sm:$0xff] }
 0xc9e   : > { %v2127_v15 = vpop.xlane.xlu0 %2126 }
 0xc9f   : > { %3777 = vrcp.f32 %v2127_v15  ;;  %v2368_v15 = vld [vmem:[#allocation10 + $0xc8] sm:$0xff] }
 0xca0   : > { %v2136_v18 = vpop.permute.xlu1 %2135  ;;  %2447 = vmatprep.subr.mxu1 %v2368_v15  ;;  %v2825_v15 = vld [vmem:[#allocation13 + $0xd0] sm:$0xff] }
 0xca2   : > { %v2138_v16 = vpop.permute.xlu0 %2137 }
 0xca3   : > { %3582 = vmatprep.subr.mxu0 %v2138_v16 }
 0xca4   : > { %3583 = vmatpush3.msra.mxu0 %v2138_v16  ;;  %v2370_v16 = vld [vmem:[#allocation10 + $0xd8] sm:$0xff] }
 0xca5   : > { %3584 = vmatprep.subr.mxu0 %v2136_v18 }
 0xca6   : > { %3585 = vmatpush3.msra.mxu0 %v2136_v18  ;;  %v2367_v18 = vld [vmem:[#allocation10 + $0xc0] sm:$0xff] }
 0xca7   : > { %3589 = vmatprep.subr.mxu0 %v2225_v19  ;;  %2448 = vmatpush1.msra.mxu1 %v2367_v18  ;;  %v2809_v18 = vld [vmem:[#allocation13 + $0x50] sm:$0xff] }
 0xcaa   : > { %v3776_v20 = vpop.eup %3775 }
 0xcab   : > { %v2134_v24 = vmul.f32 %v3776_v20, %v3772_v34  ;;  %v2377_v34 = vld [vmem:[#allocation10 + $0x110] sm:$0xff]  ;;  %v2364_v20 = vld [vmem:[#allocation10 + $0xa8] sm:$0xff] }
 0xcac   : > { %v3778_v22 = vpop.eup %3777  ;;  %2449 = vmatprep.subr.mxu1 %v2364_v20  ;;  %v2824_v20 = vld [vmem:[#allocation13 + $0xc8] sm:$0xff] }
 0xcad   : > { %v2133_v23 = vmul.f32 %v3778_v22, %v3774_v13  ;;  %v2374_v13 = vld [vmem:[#allocation10 + $0xf8] sm:$0xff] }
 0xcae   : > { %v2366_v22 = vld [vmem:[#allocation10 + $0xb8] sm:$0xff] }
 0xcaf   : > { %3586 = vmatprep.mubr.msk.f32.mxu0 %vm811_vm0, %v2133_v23  ;;  %v2363_v23 = vld [vmem:[#allocation10 + $0xa0] sm:$0xff] }
 0xcb0   : > { %3587 = vmatmul.mubr.msk.f32.vlgmr.msra.gmra.mxu0 %vm811_vm0, %v2134_v24  ;;  %v2365_v24 = vld [vmem:[#allocation10 + $0xb0] sm:$0xff]  ;;  %2450 = vmatpush1.msra.mxu1 %v2363_v23 }
 0xcb1   : > { %3590 = vmatpush3.msra.mxu0 %v2225_v19  ;;  %v2369_v19 = vld [vmem:[#allocation10 + $0xd0] sm:$0xff] }
 0xcb2   : > { %3591 = vmatprep.subr.mxu0 %v2224_v27  ;;  %v2808_v23 = vld [vmem:[#allocation13 + $0x48] sm:$0xff] }
 0xcb3   : > { %3592 = vmatpush3.msra.mxu0 %v2224_v27  ;;  %v2360_v27 = vld [vmem:[#allocation10 + $0x88] sm:$0xff] }
 0xcb4   : > { %3593 = vmatprep.subr.mxu0 %v2223_v25  ;;  %2451 = vmatprep.subr.mxu1 %v2360_v27  ;;  %v2823_v27 = vld [vmem:[#allocation13 + $0xc0] sm:$0xff] }
 0xcb5   : > { %3594 = vmatpush3.msra.mxu0 %v2223_v25  ;;  %v2362_v25 = vld [vmem:[#allocation10 + $0x98] sm:$0xff] }
 0xcb6   : > { %3595 = vmatprep.subr.mxu0 %v2222_v28 }
 0xcb7   : > { %3596 = vmatpush3.msra.mxu0 %v2222_v28  ;;  %v2359_v28 = vld [vmem:[#allocation10 + $0x80] sm:$0xff] }
 0xcb8   : > { %2506 = vmatprep.subr.mxu0 %v2406_v32  ;;  %v2355_v32 = vld [vmem:[#allocation10 + $0x60] sm:$0xff]  ;;  %2452 = vmatpush1.msra.mxu1 %v2359_v28 }
 0xcb9   : > { %v2807_v28 = vld [vmem:[#allocation13 + $0x40] sm:$0xff] }
 0xd70   : > { %v3588_v29 = vpop.f32.mrf.mxu0 }
 0xd72   : > { %v2213_v30 = vpop.f32.mrf.mxu0 }
 0xd73   : > { %3597 = vmatprep.mubr.msk.f32.mxu0 %vm1386_vm3, %v2213_v30  ;;  %v2356_v30 = vld [vmem:[#allocation10 + $0x68] sm:$0xff] }
 0xd74   : > { %3598 = vmatmul.mubr.msk.f32.vlgmr.msra.gmra.mxu0 %vm1386_vm3, %v3588_v29  ;;  %v2361_v29 = vld [vmem:[#allocation10 + $0x90] sm:$0xff]  ;;  %2453 = vmatprep.subr.mxu1 %v2356_v30  ;;  %v2822_v30 = vld [vmem:[#allocation13 + $0xb8] sm:$0xff] }
 0xd75   : > { %2570 = vmatprep.mubr.f32.mxu0 %v4150_v50  ;;  %2507 = vmatpush1.msra.mxu0 %v2405_v37  ;;  %v2352_v37 = vld [vmem:[#allocation10 + $0x48] sm:$0xff] }
 0xd76   : > { %2508 = vmatprep.subr.mxu0 %v2402_v39  ;;  %v2351_v39 = vld [vmem:[#allocation10 + $0x40] sm:$0xff]  ;;  %2454 = vmatpush1.msra.mxu1 %v2355_v32 }
 0xd77   : > { %2509 = vmatpush1.msra.mxu0 %v2401_v41  ;;  %v2348_v41 = vld [vmem:[#allocation10 + $0x28] sm:$0xff]  ;;  %2455 = vmatprep.subr.mxu1 %v2352_v37  ;;  %v2806_v32 = vld [vmem:[#allocation13 + $0x38] sm:$0xff]  ;;  %v2821_v37 = vld [vmem:[#allocation13 + $0xb0] sm:$0xff] }
 0xd78   : > { %2510 = vmatprep.subr.mxu0 %v2398_v17  ;;  %v2347_v17 = vld [vmem:[#allocation10 + $0x20] sm:$0xff]  ;;  %2456 = vmatpush1.msra.mxu1 %v2351_v39  ;;  %v2805_v39 = vld [vmem:[#allocation13 + $0x30] sm:$0xff] }
 0xd79   : > { %2511 = vmatpush1.msra.mxu0 %v2397_v11  ;;  %v2344_v11 = vld [vmem:[#allocation10 + $0x8] sm:$0xff]  ;;  %2457 = vmatprep.subr.mxu1 %v2348_v41 }
 0xd7a   : > { %2512 = vmatprep.subr.mxu0 %v2394_v26  ;;  %v2343_v26 = vld [vmem:[#allocation10] sm:$0xff]  ;;  %2458 = vmatpush1.msra.mxu1 %v2347_v17  ;;  %v2820_v41 = vld [vmem:[#allocation13 + $0xa8] sm:$0xff] }
 0xd7b   : > { %2513 = vmatpush1.msra.mxu0 %v2393_v45  ;;  %2459 = vmatprep.subr.mxu1 %v2344_v11  ;;  %v2804_v17 = vld [vmem:[#allocation13 + $0x28] sm:$0xff]  ;;  %v2819_v11 = vld [vmem:[#allocation13 + $0xa0] sm:$0xff] }
 0xd7c   : > { %2514 = vmatprep.subr.mxu0 %v2390_v62  ;;  %2460 = vmatpush1.msra.mxu1 %v2343_v26  ;;  %v2830_v62 = vld [vmem:[#allocation13 + $0xf8] sm:$0xff]  ;;  %v2803_v26 = vld [vmem:[#allocation13 + $0x20] sm:$0xff] }
 0xd7d   : > { %3361 = vmatprep.subr.mxu1 %v2830_v62  ;;  %v2847_v62 = vld [vmem:[#allocation13 + $0x180] sm:$0xff] }
 0xe34   : > { %v3599_v46 = vpop.f32.mrf.mxu0 }
 0xe35   : > { %v2308_v47 = vadd.f32 %v3599_v46, %v4659_v56 }
 0xe36   : > { %v2298_v49 = vpop.f32.mrf.mxu0 }
 0xe37   : > { %v2310_v52 = vadd.f32 %v3815_v51, %v2308_v47  ;;  %v2307_v53 = vadd.f32 %v2298_v49, %v4661_v58  ;;  %v2389_v58 = vld [vmem:[#allocation10 + $0x170] sm:$0xff] }
 0xe38   : > { %2515 = vmatpush1.msra.mxu0 %v2389_v58  ;;  %v2814_v58 = vld [vmem:[#allocation13 + $0x78] sm:$0xff] }
 0xe39   : > { %v4688_v54 = vadd.f32 %v3261_v48, %v2310_v52  ;;  %v2309_v57 = vadd.f32 %v3816_v55, %v2307_v53  ;;  %2516 = vmatprep.subr.mxu0 %v2386_v6  ;;  %v2829_v6 = vld [vmem:[#allocation13 + $0xf0] sm:$0xff] }
 0xe3a   : > { %2517 = vmatpush1.msra.mxu0 %v2385_v4  ;;  %v2813_v4 = vld [vmem:[#allocation13 + $0x70] sm:$0xff] }
 0xe3b   : > { %v4691_v59 = vadd.f32 %v3261_v48, %v2309_v57  ;;  %v2322_v60 = vmul.f32 %v4688_v54, %v4688_v54  ;;  %2518 = vmatprep.subr.mxu0 %v2382_v7  ;;  %v3262_v57 = vld [vmem:[#allocation8] ss:$0 sm:$0xff]  ;;  %v2860_v7 = vld [vmem:[#allocation13 + $0x1e8] sm:$0xff] }
 0xe3c   : > { %2519 = vmatpush1.msra.mxu0 %v2381_v1  ;;  %v2844_v1 = vld [vmem:[#allocation13 + $0x168] sm:$0xff] }
 0xe3d   : > { %2325 = vadd.xlane.f32.xlu0 %v2322_v60  ;;  %v2321_v56 = vmul.f32 %v4691_v59, %v4691_v59  ;;  %2520 = vmatprep.subr.mxu0 %v2378_v9  ;;  %v2859_v9 = vld [vmem:[#allocation13 + $0x1e0] sm:$0xff] }
 0xe3e   : > { %2521 = vmatpush1.msra.mxu0 %v2377_v34  ;;  %v2843_v34 = vld [vmem:[#allocation13 + $0x160] sm:$0xff] }
 0xe3f   : > { %2323 = vadd.xlane.f32.xlu1 %v2321_v56  ;;  %2522 = vmatprep.subr.mxu0 %v2374_v13  ;;  %v2858_v13 = vld [vmem:[#allocation13 + $0x1d8] sm:$0xff] }
 0xe40   : > { %2523 = vmatpush1.msra.mxu0 %v2373_v35  ;;  %v2842_v35 = vld [vmem:[#allocation13 + $0x158] sm:$0xff] }
 0xe41   : > { %2524 = vmatprep.subr.mxu0 %v2370_v16  ;;  %v2857_v16 = vld [vmem:[#allocation13 + $0x1d0] sm:$0xff] }
 0xe42   : > { %2525 = vmatpush1.msra.mxu0 %v2369_v19  ;;  %v2841_v19 = vld [vmem:[#allocation13 + $0x150] sm:$0xff] }
 0xe43   : > { %2526 = vmatprep.subr.mxu0 %v2366_v22  ;;  %v2856_v22 = vld [vmem:[#allocation13 + $0x1c8] sm:$0xff] }
 0xe44   : > { %2527 = vmatpush1.msra.mxu0 %v2365_v24  ;;  %v2840_v24 = vld [vmem:[#allocation13 + $0x148] sm:$0xff] }
 0xe45   : > { %2528 = vmatprep.subr.mxu0 %v2362_v25  ;;  %v2855_v25 = vld [vmem:[#allocation13 + $0x1c0] sm:$0xff] }
 0xe46   : > { %2529 = vmatpush1.msra.mxu0 %v2361_v29  ;;  %v2839_v29 = vld [vmem:[#allocation13 + $0x140] sm:$0xff] }
 0xe47   : > { %2530 = vmatprep.subr.mxu0 %v2358_v31  ;;  %v2854_v31 = vld [vmem:[#allocation13 + $0x1b8] sm:$0xff] }
 0xe48   : > { %2531 = vmatpush1.msra.mxu0 %v2357_v36  ;;  %v2838_v36 = vld [vmem:[#allocation13 + $0x138] sm:$0xff] }
 0xe49   : > { %2532 = vmatprep.subr.mxu0 %v2354_v38  ;;  %v2853_v38 = vld [vmem:[#allocation13 + $0x1b0] sm:$0xff] }
 0xe4a   : > { %2533 = vmatpush1.msra.mxu0 %v2353_v40  ;;  %v2837_v40 = vld [vmem:[#allocation13 + $0x130] sm:$0xff] }
 0xe4b   : > { %2534 = vmatprep.subr.mxu0 %v2350_v42  ;;  %v2852_v42 = vld [vmem:[#allocation13 + $0x1a8] sm:$0xff] }
 0xe4c   : > { %2535 = vmatpush1.msra.mxu0 %v2349_v21  ;;  %v2836_v21 = vld [vmem:[#allocation13 + $0x128] sm:$0xff] }
 0xe4d   : > { %2536 = vmatprep.subr.mxu0 %v2346_v43  ;;  %v2851_v43 = vld [vmem:[#allocation13 + $0x1a0] sm:$0xff] }
 0xe4e   : > { %2537 = vmatpush1.msra.mxu0 %v2345_v44  ;;  %v2835_v44 = vld [vmem:[#allocation13 + $0x120] sm:$0xff] }
 0xe4f   : > { %3399 = vmatprep.subr.mxu0 %v2862_v63  ;;  %v2799_v63 = vld [vmem:[#allocation13] sm:$0xff] }
 0xec6   : > { %v2326_v45 = vpop.xlane.xlu0 %2325 }
 0xec7   : > { %v2328_v46 = vmul.f32 0.0078125, %v2326_v45  ;;  %v2818_v45 = vld [vmem:[#allocation13 + $0x98] sm:$0xff] }
 0xec8   : > { %v2324_v47 = vpop.xlane.xlu1 %2323 }
 0xec9   : > { %v2330_v48 = vadd.f32 1e-05, %v2328_v46  ;;  %v2327_v49 = vmul.f32 0.0078125, %v2324_v47  ;;  %v2850_v46 = vld [vmem:[#allocation13 + $0x198] sm:$0xff] }
 0xeca   : > { %v2802_v47 = vld [vmem:[#allocation13 + $0x18] sm:$0xff] }
 0xecb   : > { %v2329_v51 = vadd.f32 1e-05, %v2327_v49  ;;  %3779 = vrsqrt.f32 %v2330_v48  ;;  %v2834_v48 = vld [vmem:[#allocation13 + $0x118] sm:$0xff]  ;;  %v2817_v49 = vld [vmem:[#allocation13 + $0x90] sm:$0xff] }
 0xecd   : > { %3781 = vrsqrt.f32 %v2329_v51  ;;  %v2849_v51 = vld [vmem:[#allocation13 + $0x190] sm:$0xff] }
 0xed8   : > { %v3780_v52 = vpop.eup %3779 }
 0xed9   : > { %v2334_v56 = vmul.f32 %v3780_v52, %v4688_v54  ;;  %v2801_v52 = vld [vmem:[#allocation13 + $0x10] sm:$0xff] }
 0xeda   : > { %v3782_v53 = vpop.eup %3781 }
 0xedb   : > { %v2333_v55 = vmul.f32 %v3782_v53, %v4691_v59  ;;  %v2342_v61 = vmul.f32 %v3262_v57, %v2334_v56  ;;  %v2833_v53 = vld [vmem:[#allocation13 + $0x110] sm:$0xff]  ;;  %v2832_v56 = vld [vmem:[#allocation13 + $0x108] sm:$0xff] }
 0xedd   : > { %v2341_v60 = vmul.f32 %v3262_v57, %v2333_v55  ;;  %v2816_v55 = vld [vmem:[#allocation13 + $0x88] sm:$0xff] }
 0xede   : > { %v2848_v57 = vld [vmem:[#allocation13 + $0x188] sm:$0xff] }
 0xedf   : > { %2494 = vmatmul.mubr.f32.vlgmr.msra.gmra.mxu1 %v2341_v60  ;;  %2571 = vmatmul.mubr.f32.vlgmr.msra.gmra.mxu0 %v2341_v60  ;;  %v2800_v60 = vld [vmem:[#allocation13 + $0x8] sm:$0xff] }
 0xee0   : > { %2499 = vmatprep.mubr.f32.mxu1 %v4150_v50  ;;  %2576 = vmatprep.mubr.f32.mxu0 %v4150_v50  ;;  %v2828_v50 = vld [vmem:[#allocation13 + $0xe8] sm:$0xff] }
 0xee1   : > { %3362 = vmatpush3.msra.mxu1 %v2814_v58  ;;  %3400 = vmatpush3.msra.mxu0 %v2846_v2  ;;  %v2831_v58 = vld [vmem:[#allocation13 + $0x100] sm:$0xff]  ;;  %v2411_v2 = vsub.s32 0, %v4517_v33 }
 0xee2   : > { %3363 = vmatprep.subr.mxu1 %v2829_v6  ;;  %3401 = vmatprep.subr.mxu0 %v2861_v3  ;;  %v2419_v6 = vsub.s32 2, %v4517_v33  ;;  %v2407_v3 = vld [vmem:[#allocation11] sm:$0xf] }
 0xee3   : > { %2500 = vmatmul.mubr.f32.gmra.mxu1 %v2342_v61  ;;  %2577 = vmatmul.mubr.f32.gmra.mxu0 %v2342_v61  ;;  %v2815_v61 = vld [vmem:[#allocation13 + $0x80] sm:$0xff] }
 0xee4   : > { %3364 = vmatpush3.msra.mxu1 %v2813_v4  ;;  %3402 = vmatpush3.msra.mxu0 %v2845_v5  ;;  %v2415_v4 = vsub.s32 1, %v4517_v33  ;;  %v2423_v5 = vsub.s32 3, %v4517_v33 }
 0xee5   : > { %3365 = vmatprep.subr.mxu1 %v2828_v50  ;;  %3403 = vmatprep.subr.mxu0 %v2860_v7  ;;  %v2412_v50 = vrot.slane %v2407_v3, %v2411_v2  ;;  %v2420_v7 = vrot.slane %v2407_v3, %v2419_v6 }
 0xee6   : > { %3366 = vmatpush3.msra.mxu1 %v2812_v0  ;;  %3404 = vmatpush3.msra.mxu0 %v2844_v1 }
 0xee7   : > { %3367 = vmatprep.subr.mxu1 %v2827_v8  ;;  %3405 = vmatprep.subr.mxu0 %v2859_v9  ;;  %v2416_v8 = vrot.slane %v2407_v3, %v2415_v4  ;;  %v2424_v9 = vrot.slane %v2407_v3, %v2423_v5 }
 0xee8   : > { %3368 = vmatpush3.msra.mxu1 %v2811_v10  ;;  %3406 = vmatpush3.msra.mxu0 %v2843_v34 }
 0xee9   : > { %3369 = vmatprep.subr.mxu1 %v2826_v12  ;;  %3407 = vmatprep.subr.mxu0 %v2858_v13 }
 0xeea   : > { %3370 = vmatpush3.msra.mxu1 %v2810_v14  ;;  %3408 = vmatpush3.msra.mxu0 %v2842_v35 }
 0xeeb   : > { %3371 = vmatprep.subr.mxu1 %v2825_v15  ;;  %3409 = vmatprep.subr.mxu0 %v2857_v16 }
 0xeec   : > { %3372 = vmatpush3.msra.mxu1 %v2809_v18  ;;  %3410 = vmatpush3.msra.mxu0 %v2841_v19 }
 0xeed   : > { %3373 = vmatprep.subr.mxu1 %v2824_v20  ;;  %3411 = vmatprep.subr.mxu0 %v2856_v22 }
 0xeee   : > { %3374 = vmatpush3.msra.mxu1 %v2808_v23  ;;  %3412 = vmatpush3.msra.mxu0 %v2840_v24 }
 0xeef   : > { %3375 = vmatprep.subr.mxu1 %v2823_v27  ;;  %3413 = vmatprep.subr.mxu0 %v2855_v25 }
 0xef0   : > { %3376 = vmatpush3.msra.mxu1 %v2807_v28  ;;  %3414 = vmatpush3.msra.mxu0 %v2839_v29 }
 0xef1   : > { %3377 = vmatprep.subr.mxu1 %v2822_v30  ;;  %3415 = vmatprep.subr.mxu0 %v2854_v31 }
 0xef2   : > { %3378 = vmatpush3.msra.mxu1 %v2806_v32  ;;  %3416 = vmatpush3.msra.mxu0 %v2838_v36 }
 0xef3   : > { %3379 = vmatprep.subr.mxu1 %v2821_v37  ;;  %3417 = vmatprep.subr.mxu0 %v2853_v38 }
 0xef4   : > { %3380 = vmatpush3.msra.mxu1 %v2805_v39  ;;  %3418 = vmatpush3.msra.mxu0 %v2837_v40 }
 0xef5   : > { %3381 = vmatprep.subr.mxu1 %v2820_v41  ;;  %3419 = vmatprep.subr.mxu0 %v2852_v42 }
 0xef6   : > { %3382 = vmatpush3.msra.mxu1 %v2804_v17  ;;  %3420 = vmatpush3.msra.mxu0 %v2836_v21 }
 0xef7   : > { %3383 = vmatprep.subr.mxu1 %v2819_v11  ;;  %3421 = vmatprep.subr.mxu0 %v2851_v43 }
 0xef8   : > { %3384 = vmatpush3.msra.mxu1 %v2803_v26  ;;  %3422 = vmatpush3.msra.mxu0 %v2835_v44 }
 0xef9   : > { %3385 = vmatprep.subr.mxu1 %v2818_v45  ;;  %3423 = vmatprep.subr.mxu0 %v2850_v46 }
 0xefa   : > { %3386 = vmatpush3.msra.mxu1 %v2802_v47  ;;  %3424 = vmatpush3.msra.mxu0 %v2834_v48 }
 0xefb   : > { %3387 = vmatprep.subr.mxu1 %v2817_v49  ;;  %3425 = vmatprep.subr.mxu0 %v2849_v51 }
 0xefc   : > { %3388 = vmatpush3.msra.mxu1 %v2801_v52  ;;  %3426 = vmatpush3.msra.mxu0 %v2833_v53 }
 0xefd   : > { %3389 = vmatprep.subr.mxu1 %v2816_v55  ;;  %3427 = vmatprep.subr.mxu0 %v2848_v57 }
 0xefe   : > { %3390 = vmatpush3.msra.mxu1 %v2800_v60  ;;  %3428 = vmatpush3.msra.mxu0 %v2832_v56 }
 0xeff   : > { %3391 = vmatprep.subr.mxu1 %v2815_v61  ;;  %3429 = vmatprep.subr.mxu0 %v2847_v62 }
 0xf00   : > { %3392 = vmatpush3.msra.mxu1 %v2799_v63  ;;  %3430 = vmatpush3.msra.mxu0 %v2831_v58 }
 0xf9f   : > { %v2495_v0 = vpop.f32.mrf.mxu1  ;;  %v2572_v1 = vpop.f32.mrf.mxu0 }
 0xfa0   : > { %v4705_v10 = vadd.f32 %v2495_v0, %v2412_v50  ;;  %v4707_v34 = vadd.f32 %v2572_v1, %v2420_v7 }
 0xfa1   : > { %v2497_v12 = vpop.f32.mrf.mxu1  ;;  %v2574_v13 = vpop.f32.mrf.mxu0 }
 0xfa2   : > { %v4710_v14 = vmul.f32 0.70710677, %v4705_v10  ;;  %v4713_v35 = vmul.f32 0.70710677, %v4707_v34  ;;  %v4715_v15 = vadd.f32 %v2497_v12, %v2416_v8  ;;  %v4717_v33 = vadd.f32 %v2574_v13, %v2424_v9 }
 0xfa3   : > { %v2501_v24 = vpop.f32.mrf.mxu1  ;;  %v2578_v36 = vpop.f32.mrf.mxu0 }
 0xfa4   : > { %v2599_v16 = vand.u32 2147483647, %v4710_v14  ;;  %v2601_v18 = vand.u32 2147483647, %v4713_v35  ;;  %v4722_v19 = vmul.f32 0.70710677, %v4715_v15  ;;  %v4729_v32 = vadd.f32 %v2501_v24, %v2412_v50 }
 0xfa5   : > { %v4725_v20 = vmul.f32 0.70710677, %v4717_v33  ;;  %v2503_v37 = vpop.f32.mrf.mxu1  ;;  %v4734_v41 = vadd.f32 %v2578_v36, %v2420_v7  ;;  %v2580_v21 = vpop.f32.mrf.mxu0  ;;  %vm2759_vm4 = vcmp.ge.f32.partialorder %v4710_v14, 0.0  ;;  %vm2761_vm5 = vcmp.ge.f32.partialorder %v4713_v35, 0.0 }
 0xfa6   : > { %v2607_v22 = vmul.f32 0.3275911, %v2599_v16  ;;  %v2609_v23 = vmul.f32 0.3275911, %v2601_v18  ;;  %v2600_v27 = vand.u32 2147483647, %v4722_v19  ;;  %v4736_v42 = vadd.f32 %v2503_v37, %v2416_v8 }
 0xfa7   : > { %v2602_v25 = vand.u32 2147483647, %v4725_v20  ;;  %v4732_v40 = vmul.f32 0.70710677, %v4729_v32  ;;  %v2711_v11 = vsub.f32 0.0, %v2599_v16  ;;  %v2713_v26 = vsub.f32 0.0, %v2601_v18 }
 0xfa8   : > { %v2615_v28 = vadd.f32 1.0, %v2607_v22  ;;  %v2617_v29 = vadd.f32 1.0, %v2609_v23  ;;  %v2608_v30 = vmul.f32 0.3275911, %v2600_v27  ;;  %v4740_v43 = vmul.f32 0.70710677, %v4734_v41 }
 0xfa9   : > { %v2610_v31 = vmul.f32 0.3275911, %v2602_v25  ;;  %v2603_v17 = vand.u32 2147483647, %v4732_v40  ;;  %v4743_v45 = vmul.f32 0.70710677, %v4736_v42  ;;  %v4746_v47 = vadd.f32 %v2580_v21, %v2424_v9 }
 0xfaa   : > { %3783 = vrcp.f32 %v2615_v28  ;;  %v2616_v38 = vadd.f32 1.0, %v2608_v30  ;;  %v2605_v46 = vand.u32 2147483647, %v4740_v43  ;;  %v2712_v48 = vsub.f32 0.0, %v2600_v27 }
 0xfab   : > { %3785 = vrcp.f32 %v2617_v29  ;;  %v2618_v39 = vadd.f32 1.0, %v2610_v31  ;;  %v2611_v44 = vmul.f32 0.3275911, %v2603_v17  ;;  %v2604_v51 = vand.u32 2147483647, %v4743_v45 }
 0xfac   : > { %3787 = vrcp.f32 %v2616_v38  ;;  %v2719_v52 = vmul.f32 %v2711_v11, %v2599_v16  ;;  %v2613_v53 = vmul.f32 0.3275911, %v2605_v46  ;;  %v4750_v55 = vmul.f32 0.70710677, %v4746_v47 }
 0xfad   : > { %3789 = vrcp.f32 %v2618_v39  ;;  %v2619_v49 = vadd.f32 1.0, %v2611_v44  ;;  %v2721_v57 = vmul.f32 %v2713_v26, %v2601_v18  ;;  %v2714_v60 = vsub.f32 0.0, %v2602_v25 }
 0xfae   : > { %v2612_v56 = vmul.f32 0.3275911, %v2604_v51  ;;  %v2715_v61 = vsub.f32 0.0, %v2603_v17  ;;  %v2621_v62 = vadd.f32 1.0, %v2613_v53  ;;  %v2606_v63 = vand.u32 2147483647, %v4750_v55 }
 0xfaf   : > { %3791 = vrcp.f32 %v2619_v49  ;;  %v2720_v58 = vmul.f32 %v2712_v48, %v2600_v27  ;;  %v2727_v3 = vmul.f32 1.442695, %v2719_v52  ;;  %v2717_v4 = vsub.f32 0.0, %v2605_v46 }
 0xfb0   : > { %v2620_v2 = vadd.f32 1.0, %v2612_v56  ;;  %3793 = vrcp.f32 %v2621_v62  ;;  %v2614_v5 = vmul.f32 0.3275911, %v2606_v63  ;;  %v2731_v0 = vmul.f32 1.442695, %v2721_v57 }
 0xfb1   : > { %v2722_v1 = vmul.f32 %v2714_v60, %v2602_v25  ;;  %v2723_v9 = vmul.f32 %v2715_v61, %v2603_v17  ;;  %v2716_v12 = vsub.f32 0.0, %v2604_v51  ;;  %v2729_v18 = vmul.f32 1.442695, %v2720_v58 }
 0xfb2   : > { %3795 = vrcp.f32 %v2620_v2  ;;  %v2622_v13 = vadd.f32 1.0, %v2614_v5  ;;  %v2725_v24 = vmul.f32 %v2717_v4, %v2605_v46  ;;  %v2718_v27 = vsub.f32 0.0, %v2606_v63 }
 0xfb3   : > { %v2733_v29 = vmul.f32 1.442695, %v2722_v1  ;;  %v2735_v36 = vmul.f32 1.442695, %v2723_v9  ;;  %v2724_v37 = vmul.f32 %v2716_v12, %v2604_v51  ;;  %vm2760_vm6 = vcmp.ge.f32.partialorder %v4722_v19, 0.0 }
 0xfb4   : > { %3797 = vrcp.f32 %v2622_v13  ;;  %v2739_v11 = vmul.f32 1.442695, %v2725_v24  ;;  %v2726_v26 = vmul.f32 %v2718_v27, %v2606_v63  ;;  %vm2762_vm7 = vcmp.ge.f32.partialorder %v4725_v20, 0.0 }
 0xfb5   : > { %3799 = vpow2.f32 %v2727_v3  ;;  %v2737_v51 = vmul.f32 1.442695, %v2724_v37  ;;  %vm2763_vm8 = vcmp.ge.f32.partialorder %v4732_v40, 0.0  ;;  %vm2764_vm9 = vcmp.ge.f32.partialorder %v4743_v45, 0.0 }
 0xfb6   : > { %3801 = vpow2.f32 %v2731_v0  ;;  %v2741_v62 = vmul.f32 1.442695, %v2726_v26  ;;  %vm2765_vm10 = vcmp.ge.f32.partialorder %v4740_v43, 0.0  ;;  %vm2766_vm11 = vcmp.ge.f32.partialorder %v4750_v55, 0.0  ;;  %v3263_v55 = vld [vmem:[#allocation14] ss:$0 sm:$0xff] }
 0xfb7   : > { %v4753_v6 = vpop.eup %3783  ;;  %3803 = vpow2.f32 %v2729_v18  ;;  %v2590_v45 = vmul.f32 0.5, %v4746_v47 }
 0xfb8   : > { %v4755_v50 = vpop.eup %3785  ;;  %v2639_v7 = vmul.f32 1.0614054, %v4753_v6  ;;  %3805 = vpow2.f32 %v2733_v29 }
 0xfb9   : > { %v2641_v8 = vmul.f32 1.0614054, %v4755_v50  ;;  %v4759_v22 = vpop.eup %3787  ;;  %3807 = vpow2.f32 %v2735_v36 }
 0xfba   : > { %v2647_v16 = vadd.f32 -1.4531521, %v2639_v7  ;;  %v2640_v25 = vmul.f32 1.0614054, %v4759_v22  ;;  %v4763_v30 = vpop.eup %3789  ;;  %3809 = vpow2.f32 %v2739_v11  ;;  %v4781_v7 = vmul.f32 0.5, %v4705_v10 }
 0xfbb   : > { %v2649_v23 = vadd.f32 -1.4531521, %v2641_v8  ;;  %v2642_v17 = vmul.f32 1.0614054, %v4763_v30  ;;  %3811 = vpow2.f32 %v2737_v51 }
 0xfbc   : > { %v2655_v28 = vmul.f32 %v4753_v6, %v2647_v16  ;;  %v2648_v39 = vadd.f32 -1.4531521, %v2640_v25  ;;  %v4769_v49 = vpop.eup %3791  ;;  %3813 = vpow2.f32 %v2741_v62 }
 0xfbd   : > { %v2657_v31 = vmul.f32 %v4755_v50, %v2649_v23  ;;  %v2650_v48 = vadd.f32 -1.4531521, %v2642_v17  ;;  %v2643_v56 = vmul.f32 1.0614054, %v4769_v49  ;;  %v4774_v63 = vpop.eup %3793 }
 0xfbe   : > { %v2663_v38 = vadd.f32 1.4214138, %v2655_v28  ;;  %v2656_v46 = vmul.f32 %v4759_v22, %v2648_v39  ;;  %v2645_v1 = vmul.f32 1.0614054, %v4774_v63 }
 0xfbf   : > { %v2665_v21 = vadd.f32 1.4214138, %v2657_v31  ;;  %v2658_v60 = vmul.f32 %v4763_v30, %v2650_v48  ;;  %v2651_v4 = vadd.f32 -1.4531521, %v2643_v56  ;;  %v4778_v5 = vpop.eup %3795 }
 0xfc0   : > { %v2671_v44 = vmul.f32 %v4753_v6, %v2663_v38  ;;  %v2664_v57 = vadd.f32 1.4214138, %v2656_v46  ;;  %v2644_v13 = vmul.f32 1.0614054, %v4778_v5  ;;  %v2653_v23 = vadd.f32 -1.4531521, %v2645_v1 }
 0xfc1   : > { %v2673_v52 = vmul.f32 %v4755_v50, %v2665_v21  ;;  %v2666_v3 = vadd.f32 1.4214138, %v2658_v60  ;;  %v2659_v18 = vmul.f32 %v4769_v49, %v2651_v4  ;;  %v4788_v24 = vpop.eup %3797 }
 0xfc2   : > { %v2679_v53 = vadd.f32 -0.28449672, %v2671_v44  ;;  %v2672_v2 = vmul.f32 %v4759_v22, %v2664_v57  ;;  %v2652_v29 = vadd.f32 -1.4531521, %v2644_v13  ;;  %v3800_v25 = vpop.eup %3799  ;;  %v2646_v36 = vmul.f32 1.0614054, %v4788_v24 }
 0xfc3   : > { %v2681_v61 = vadd.f32 -0.28449672, %v2673_v52  ;;  %v2674_v12 = vmul.f32 %v4763_v30, %v2666_v3  ;;  %v2667_v37 = vadd.f32 1.4214138, %v2659_v18  ;;  %v2661_v38 = vmul.f32 %v4774_v63, %v2653_v23  ;;  %v3802_v39 = vpop.eup %3801 }
 0xfc4   : > { %v2687_v58 = vmul.f32 %v4753_v6, %v2679_v53  ;;  %v2680_v9 = vadd.f32 -0.28449672, %v2672_v2  ;;  %v2660_v11 = vmul.f32 %v4778_v5, %v2652_v29  ;;  %v2654_v44 = vadd.f32 -1.4531521, %v2646_v36 }
 0xfc5   : > { %v2689_v0 = vmul.f32 %v4755_v50, %v2681_v61  ;;  %v2682_v28 = vadd.f32 -0.28449672, %v2674_v12  ;;  %v2675_v46 = vmul.f32 %v4769_v49, %v2667_v37  ;;  %v2669_v48 = vadd.f32 1.4214138, %v2661_v38 }
 0xfc6   : > { %v2695_v8 = vadd.f32 0.2548296, %v2687_v58  ;;  %v2688_v27 = vmul.f32 %v4759_v22, %v2680_v9  ;;  %v2668_v57 = vadd.f32 1.4214138, %v2660_v11  ;;  %v2662_v61 = vmul.f32 %v4788_v24, %v2654_v44 }
 0xfc7   : > { %v2697_v16 = vadd.f32 0.2548296, %v2689_v0  ;;  %v2683_v62 = vadd.f32 -0.28449672, %v2675_v46  ;;  %v2677_v58 = vmul.f32 %v4774_v63, %v2669_v48 }
 0xfc8   : > { %v2703_v10 = vmul.f32 %v4753_v6, %v2695_v8  ;;  %v2696_v21 = vadd.f32 0.2548296, %v2688_v27  ;;  %v2690_v6 = vmul.f32 %v4763_v30, %v2682_v28  ;;  %v2676_v1 = vmul.f32 %v4778_v5, %v2668_v57 }
 0xfc9   : > { %v2705_v31 = vmul.f32 %v4755_v50, %v2697_v16  ;;  %v3804_v50 = vpop.eup %3803  ;;  %v2670_v9 = vadd.f32 1.4214138, %v2662_v61  ;;  %v2685_v12 = vadd.f32 -0.28449672, %v2677_v58  ;;  %v2584_v16 = vmul.f32 0.5, %v4715_v15 }
 0xfca   : > { %v2743_v17 = vmul.f32 %v3800_v25, %v2703_v10  ;;  %v2704_v51 = vmul.f32 %v4759_v22, %v2696_v21  ;;  %v2698_v53 = vadd.f32 0.2548296, %v2690_v6  ;;  %v3806_v60 = vpop.eup %3805  ;;  %v2691_v22 = vmul.f32 %v4769_v49, %v2683_v62 }
 0xfcb   : > { %v2745_v26 = vmul.f32 %v3802_v39, %v2705_v31  ;;  %v3808_v2 = vpop.eup %3807  ;;  %v2684_v10 = vadd.f32 -0.28449672, %v2676_v1  ;;  %v2693_v14 = vmul.f32 %v4774_v63, %v2685_v12  ;;  %v2587_v12 = vmul.f32 0.5, %v4729_v32 }
 0xfcc   : > { %v2751_v52 = vsub.f32 1.0, %v2743_v17  ;;  %v2744_v4 = vmul.f32 %v3804_v50, %v2704_v51  ;;  %v2706_v0 = vmul.f32 %v4763_v30, %v2698_v53  ;;  %v3810_v13 = vpop.eup %3809  ;;  %v2678_v30 = vmul.f32 %v4788_v24, %v2670_v9 }
 0xfcd   : > { %v2753_v56 = vsub.f32 1.0, %v2745_v26  ;;  %v2699_v28 = vadd.f32 0.2548296, %v2691_v22  ;;  %v3812_v29 = vpop.eup %3811  ;;  %v2692_v36 = vmul.f32 %v4778_v5, %v2684_v10  ;;  %v2701_v46 = vadd.f32 0.2548296, %v2693_v14 }
 0xfce   : > { %v2767_v3 = vsub.f32 0.0, %v2751_v52  ;;  %v2752_v18 = vsub.f32 1.0, %v2744_v4  ;;  %v2746_v23 = vmul.f32 %v3806_v60, %v2706_v0  ;;  %v2686_v37 = vadd.f32 -0.28449672, %v2678_v30  ;;  %v3814_v39 = vpop.eup %3813 }
 0xfcf   : > { %v2769_v8 = vsub.f32 0.0, %v2753_v56  ;;  %v2707_v38 = vmul.f32 %v4769_v49, %v2699_v28  ;;  %v2700_v6 = vadd.f32 0.2548296, %v2692_v36  ;;  %v2586_v50 = vmul.f32 0.5, %v4717_v33 }
 0xfd0   : > { %v2775_v27 = vsel %vm2759_vm4, %v2751_v52, %v2767_v3  ;;  %v2768_v25 = vsub.f32 0.0, %v2752_v18  ;;  %v2754_v31 = vsub.f32 1.0, %v2746_v23  ;;  %v2694_v26 = vmul.f32 %v4788_v24, %v2686_v37 }
 0xfd1   : > { %v2777_v15 = vsel %vm2761_vm5, %v2753_v56, %v2769_v8  ;;  %v2783_v19 = vadd.f32 1.0, %v2775_v27  ;;  %v2747_v44 = vmul.f32 %v3808_v2, %v2707_v38  ;;  %v2708_v49 = vmul.f32 %v4778_v5, %v2700_v6 }
 0xfd2   : > { %v2776_v17 = vsel %vm2760_vm6, %v2752_v18, %v2768_v25  ;;  %v2770_v21 = vsub.f32 0.0, %v2754_v31  ;;  %v2785_v48 = vadd.f32 1.0, %v2777_v15  ;;  %v2702_v53 = vadd.f32 0.2548296, %v2694_v26 }
 0xfd3   : > { %v2784_v11 = vadd.f32 1.0, %v2776_v17  ;;  %v2755_v57 = vsub.f32 1.0, %v2747_v44  ;;  %v2791_v60 = vmul.f32 %v2783_v19, %v4781_v7  ;;  %v2585_v56 = vmul.f32 0.5, %v4707_v34 }
 0xfd4   : > { %v2778_v35 = vsel %vm2762_vm7, %v2754_v31, %v2770_v21  ;;  %v2748_v61 = vmul.f32 %v3812_v29, %v2708_v49  ;;  %v2709_v62 = vmul.f32 %v4774_v63, %v2701_v46  ;;  %v2710_v33 = vmul.f32 %v4788_v24, %v2702_v53 }
 0xfd5   : > { %v2792_v52 = vmul.f32 %v2784_v11, %v2584_v16  ;;  %v2786_v51 = vadd.f32 1.0, %v2778_v35  ;;  %v2771_v2 = vsub.f32 0.0, %v2755_v57  ;;  %v2793_v20 = vmul.f32 %v2785_v48, %v2585_v56 }
 0xfd6   : > { %v2756_v5 = vsub.f32 1.0, %v2748_v61  ;;  %v2749_v3 = vmul.f32 %v3810_v13, %v2709_v62  ;;  %v2750_v4 = vmul.f32 %v3814_v39, %v2710_v33  ;;  %v2588_v24 = vmul.f32 0.5, %v4736_v42 }
 0xfd7   : > { %2934 = vmatprep.mubr.f32.mxu1 %v2792_v52  ;;  %v2794_v58 = vmul.f32 %v2786_v51, %v2586_v50  ;;  %v2779_v0 = vsel %vm2763_vm8, %v2755_v57, %v2771_v2  ;;  %v2589_v30 = vmul.f32 0.5, %v4734_v41 }
 0xfd8   : > { %2935 = vmatmul.mubr.f32.vlgmr.msra.gmra.mxu1 %v2791_v60  ;;  %v2772_v7 = vsub.f32 0.0, %v2756_v5  ;;  %v2757_v34 = vsub.f32 1.0, %v2749_v3  ;;  %v2758_v63 = vsub.f32 1.0, %v2750_v4  ;;  %v2787_v8 = vadd.f32 1.0, %v2779_v0 }
 0xfd9   : > { %3009 = vmatprep.mubr.f32.mxu0 %v2794_v58 }
 0xfda   : > { %3010 = vmatmul.mubr.f32.vlgmr.msra.gmra.mxu0 %v2793_v20  ;;  %v2780_v1 = vsel %vm2764_vm9, %v2756_v5, %v2772_v7  ;;  %v2773_v9 = vsub.f32 0.0, %v2757_v34  ;;  %v2774_v22 = vsub.f32 0.0, %v2758_v63  ;;  %v2795_v27 = vmul.f32 %v2787_v8, %v2587_v12 }
 0xfdb   : > { %v2788_v40 = vadd.f32 1.0, %v2780_v1 }
 0xfdc   : > { %v2781_v13 = vsel %vm2765_vm10, %v2757_v34, %v2773_v9  ;;  %v2782_v18 = vsel %vm2766_vm11, %v2758_v63, %v2774_v22 }
 0xfdd   : > { %v2796_v16 = vmul.f32 %v2788_v40, %v2588_v24  ;;  %v2789_v23 = vadd.f32 1.0, %v2781_v13  ;;  %v2790_v10 = vadd.f32 1.0, %v2782_v18 }
 0xfdf   : > { %2939 = vmatprep.mubr.f32.mxu1 %v2796_v16  ;;  %v2798_v43 = vmul.f32 %v2790_v10, %v2590_v45  ;;  %v2797_v42 = vmul.f32 %v2789_v23, %v2589_v30 }
 0xfe0   : > { %2940 = vmatmul.mubr.f32.gmra.mxu1 %v2795_v27 }
 0xfe1   : > { %3014 = vmatprep.mubr.f32.mxu0 %v2798_v43 }
 0xfe2   : > { %3015 = vmatmul.mubr.f32.gmra.mxu0 %v2797_v42 }
0x1098   : > { %v3393_v32 = vpop.f32.mrf.mxu1 }
0x109a   : > { %v3431_v28 = vpop.f32.mrf.mxu0  ;;  %v3394_v29 = vpop.f32.mrf.mxu1 }
0x109b   : > { %v3395_v25 = vadd.f32 %v3394_v29, %v3393_v32 }
0x109c   : > { %v3432_v31 = vpop.f32.mrf.mxu0 }
0x109d   : > { %v2937_v36 = vadd.f32 %v3395_v25, %v3263_v55  ;;  %v3433_v47 = vadd.f32 %v3432_v31, %v3431_v28 }
0x109f   : > { %v3012_v15 = vadd.f32 %v3433_v47, %v2937_v36 }
0x10a0   : > { %v3396_v41 = vpop.f32.mrf.mxu1 }
0x10a1   : > { %v3020_v37 = vadd.f32 %v3012_v15, %v4691_v59 }
0x10a2   : > { %v3397_v38 = vpop.f32.mrf.mxu1  ;;  %v3434_v14 = vpop.f32.mrf.mxu0 }
0x10a3   : > { %3022 = vst [vmem:[%s541_s6] sm:$0xff] %v3020_v37  ;;  %v3398_v39 = vadd.f32 %v3397_v38, %v3396_v41 }
0x10a4   : > { %v3435_v17 = vpop.f32.mrf.mxu0 }
0x10a5   : > { %v2942_v19 = vadd.f32 %v3398_v39, %v3263_v55  ;;  %v3436_v21 = vadd.f32 %v3435_v17, %v3434_v14 }
0x10a7   : > { %v3017_v59 = vadd.f32 %v3436_v21, %v2942_v19 }
0x10a9   : > { %v3021_v6 = vadd.f32 %v3017_v59, %v4688_v54 }
0x10ab   : > { %3023 = vst [vmem:[%s541_s6 + $0x8] sm:$0xff] %v3021_v6 }
0x10ac   : > { %4066 = shalt.err (!%p4063_p2)
}
0x10ad   : > { %s4067_s17 = scalar_lea.hbm %s4843_s9, 256  ;;  %s4071_s30 = scalar_lea.hbm %s4945_s29, 512 }
0x10ae   : > { %p4068_p4 = scmp.ne.s32.totalorder %s4843_s9, %s4067_s17  ;;  %p4072_p10 = scmp.lt.s32.totalorder %s4843_s9, %s4945_s29 }
0x10af   : > { %p4073_p1 = scmp.lt.s32.totalorder %s4071_s30, %s4067_s17 }
0x10b0   : > { %p4069_p9 = pnand %p4068_p4, %p4946_p13 }
0x10b1   : > { %p4074_p3 = por %p4073_p1, %p4072_p10 }
0x10b2   : > { %p4070_p11 = pneg %p4069_p9 }
0x10b4   : > { %p4075_p12 = pnand %p4074_p3, %p4070_p11 }
0x10b6   : > { %4078 = shalt.err (!%p4075_p12)
}
0x10b7   : > { %s4159_s7 = smov 128   ;;  %s4160_s28 = smov 8  }
0x10b8   : > { %3634 = dma.vmem_to_hbm [thread:$0]  (%p4946_p13), %s4838_s5, 256, %s4843_s9, %s3025_s12, %s4159_s7, %s4159_s7, %s4160_s28  }
0x10b9 PF: > { %s3053_s14 = sand.u32 1, %s4121_s21   ;;  %p4947_p5 = scmp.ne.s32.totalorder %s4933_s18, 0 }
0x10ba   : > { %p4948_p8 = scmp.ge.s32.totalorder %s4133_s24, 2  ;;  %s3054_s25 = scalar_lea.sflag [#allocation4], %s3053_s14 }
0x10bc   : > { %p3666_p7 = pnand %p4948_p8, %p4947_p5 }
0x10be   : > { %p3667_p6 = pneg %p3666_p7 }
0x10c0   : > { %4116 = dma.done.wait (%p3667_p6), %s3054_s25, 256  }
0x10c1   : > { %4118 = vsyncadd (%p3667_p6), %s3054_s25, 4294967040  ;;  %p29_p0 = scmp.ge.s32.totalorder %s4345_s16, 4   ;;  %s4949_s21 = smov %s4125_s22 }
0x10c2   : > { %s4950_s22 = smov %s4129_s23  ;;  %s4951_s23 = smov %s4356_s20 }
0x10c3   : > { %s4952_s24 = smov %s4345_s16  ;;  %31 = sbr.rel (!%p29_p0) target bundleno = 18 (0x12), region = 145 }
0x10c8   :  { %3059 = vsyncpa [#allocation3], 1 }
0x10c9   :  { %3061 = vsyncpa [#allocation3 + $0x1], 1 }
0x10ca   :  { %3062 = vsyncpa [#allocation6], 1 }
0x10cb   :  { %3063 = vsyncpa [#allocation9], 1 }
0x10cc   :  { %3064 = vsyncpa [#allocation12], 1 }
0x10cd   :  { %3065 = vsyncpa [#allocation15], 1 }
0x10ce   :  { %3066 = vsyncpa [#allocation4], 1 }
0x10cf   :  { %3068 = vsyncpa [#allocation4 + $0x1], 1 }

</bundles_post_ra>
